<compile_context>
chip_gen: v7x
topology: tpu7x:2x2x1
jax: 0.10.0
libtpu: 0.0.40
codegen_flags: <defaults>
</compile_context>

<pallas_src>
import functools

import jax
import jax.numpy as jnp
from jax.experimental import pallas as pl
from jax.experimental.pallas import tpu as pltpu


LANES = 128


def _round_up(x, m):
    return (x + m - 1) // m * m


def _pick_tile(total, max_tile, align=16):
    """Row-tile size (multiple of `align`) and padded extent.

    Prefers >= 2 tiles so the 'parallel' grid axis can be sharded across both
    TensorCores on v7x; harmless on single-TC v5e/v6e at these sizes.
    """
    tile = min(_round_up(max_tile, align), _round_up(max(total, align), align))
    if _round_up(total, tile) // tile < 2 and tile > align:
        tile = max(align, _round_up(pl.cdiv(tile, 2), align))
    return tile, _round_up(total, tile)


# ----------------------------------------------------------------------------
# Pallas kernels
# ----------------------------------------------------------------------------
def _conv_pool_kernel(a_ref, w_ref, b_ref, o_ref, *, slope):
    """Fused conv-as-matmul + 2x2 max-pool + bias + leaky_relu.

    a_ref: (4, tile_g, K) bf16 -- the four members of each 2x2 pool window for
    tile_g pooled output positions.  The pool max is taken over the raw matmul
    outputs, then bias and leaky_relu are applied once (they commute with max).
    """
    w = w_ref[...]
    y = jnp.dot(a_ref[0], w, preferred_element_type=jnp.float32)
    for m in range(1, 4):
        y = jnp.maximum(y, jnp.dot(a_ref[m], w, preferred_element_type=jnp.float32))
    y = y + b_ref[...]                        # (1, 128) bias broadcasts over rows
    y = jnp.where(y >= 0.0, y, slope * y)     # leaky_relu in f32
    o_ref[...] = y.astype(o_ref.dtype)        # bf16 writeback


def _fc_head_kernel(x_ref, w1_ref, b1_ref, w2_ref, b2_ref, w3_ref, b3_ref,
                    o_ref, *, slope):
    """Fused fc1 -> fc2 -> fc3 (leaky_relu after fc1/fc2, none after fc3)."""
    h = jnp.dot(x_ref[...], w1_ref[...], preferred_element_type=jnp.float32)
    h = h + b1_ref[...]
    h = jnp.where(h >= 0.0, h, slope * h)
    h = jnp.dot(h.astype(jnp.bfloat16), w2_ref[...],
                preferred_element_type=jnp.float32)
    h = h + b2_ref[...]
    h = jnp.where(h >= 0.0, h, slope * h)
    y = jnp.dot(h.astype(jnp.bfloat16), w3_ref[...],
                preferred_element_type=jnp.float32)
    o_ref[...] = y + b3_ref[...]


# ----------------------------------------------------------------------------
# Wrappers
# ----------------------------------------------------------------------------
def _pool_grouped_im2col(x, k):
    """x: (N, H, W, C) NHWC -> A: (4, G, K) pool-grouped patches.

    K = k*k*C with flat index ((i*k + j)*C + c); A[py*2+px, (n*Hp+yo)*Wp+xo]
    is the patch at (y=2*yo+py, x=2*xo+px), so the four members of each 2x2
    max-pool window share a G index.
    """
    n, h, w, c = x.shape
    ho, wo = h - k + 1, w - k + 1
    hp, wp = ho // 2, wo // 2
    cols = []
    for i in range(k):
        for j in range(k):
            cols.append(x[:, i:i + ho, j:j + wo, :])
    p = jnp.stack(cols, axis=3).reshape(n, ho, wo, k * k * c)
    members = [p[:, py::2, px::2, :] for py in range(2) for px in range(2)]
    a = jnp.stack(members, axis=0).reshape(4, n * hp * wp, k * k * c)
    return a, (n, hp, wp)


def conv_leaky_pool(x_nhwc, w_pad, b_pad, cout, slope, *, k=5, tile_rows=512):
    """Valid conv (k,k,stride 1) + leaky_relu + maxpool(2,2), one kernel.

    w_pad: (Kp, 128) bf16 weight matrix (Kp = 16-multiple), b_pad: (1, 128) f32.
    Returns (N, Ho//2, Wo//2, cout) bfloat16.
    """
    a, (n, hp, wp) = _pool_grouped_im2col(x_nhwc, k)
    g, kdim = a.shape[1], a.shape[2]
    kp = w_pad.shape[0]                       # K rounded up to 16-multiple only
    tile_g, gp = _pick_tile(g, tile_rows)
    a = jnp.pad(a, ((0, 0), (0, gp - g), (0, kp - kdim))).astype(jnp.bfloat16)

    out = pl.pallas_call(
        functools.partial(_conv_pool_kernel, slope=float(slope)),
        out_shape=jax.ShapeDtypeStruct((gp, LANES), jnp.bfloat16),
        grid=(gp // tile_g,),
        in_specs=[
            pl.BlockSpec((4, tile_g, kp), lambda i: (0, i, 0)),
            pl.BlockSpec((kp, LANES), lambda i: (0, 0)),
            pl.BlockSpec((1, LANES), lambda i: (0, 0)),
        ],
        out_specs=pl.BlockSpec((tile_g, LANES), lambda i: (i, 0)),
        compiler_params=pltpu.CompilerParams(
            dimension_semantics=("parallel",),
            vmem_limit_bytes=32 * 1024 * 1024),
        cost_estimate=pl.CostEstimate(
            flops=2 * 4 * gp * kp * LANES,
            transcendentals=0,
            bytes_accessed=(4 * gp * kp * 2 + kp * LANES * 2
                            + LANES * 4 + gp * LANES * 2)),
    )(a, w_pad, b_pad)

    return out[:g, :cout].reshape(n, hp, wp, cout)


def fc_head(x, w1, b1, w2, b2, w3, b3, n_out, slope, *, tile_rows=512):
    """Fused fc1->fc2->fc3.  x: (B, Kin); weights pre-padded (Kp, 128) bf16."""
    m, kin = x.shape
    kp = w1.shape[0]
    tile_m, mp = _pick_tile(m, tile_rows)
    x = jnp.pad(x, ((0, mp - m), (0, kp - kin))).astype(jnp.bfloat16)

    out = pl.pallas_call(
        functools.partial(_fc_head_kernel, slope=float(slope)),
        out_shape=jax.ShapeDtypeStruct((mp, LANES), jnp.float32),
        grid=(mp // tile_m,),
        in_specs=[
            pl.BlockSpec((tile_m, kp), lambda i: (i, 0)),
            pl.BlockSpec((kp, LANES), lambda i: (0, 0)),
            pl.BlockSpec((1, LANES), lambda i: (0, 0)),
            pl.BlockSpec((LANES, LANES), lambda i: (0, 0)),
            pl.BlockSpec((1, LANES), lambda i: (0, 0)),
            pl.BlockSpec((LANES, LANES), lambda i: (0, 0)),
            pl.BlockSpec((1, LANES), lambda i: (0, 0)),
        ],
        out_specs=pl.BlockSpec((tile_m, LANES), lambda i: (i, 0)),
        compiler_params=pltpu.CompilerParams(
            dimension_semantics=("parallel",),
            vmem_limit_bytes=32 * 1024 * 1024),
        cost_estimate=pl.CostEstimate(
            flops=2 * mp * LANES * (kp + LANES + LANES),
            transcendentals=0,
            bytes_accessed=(mp * kp * 2 + (kp + 2 * LANES) * LANES * 2
                            + 3 * LANES * 4 + mp * LANES * 4)),
    )(x, w1, b1, w2, b2, w3, b3)

    return out[:m, :n_out]


# ----------------------------------------------------------------------------
# Parameters (PyTorch layout) and one-time conversion to kernel layout
# ----------------------------------------------------------------------------
def init_params(key):
    ks = jax.random.split(key, 10)

    def u(k, shape, fan_in):
        bound = 1.0 / jnp.sqrt(fan_in)
        return jax.random.uniform(k, shape, jnp.float32, -bound, bound)

    return {
        "conv1_w": u(ks[0], (6, 3, 5, 5), 3 * 5 * 5),
        "conv1_b": u(ks[1], (6,), 3 * 5 * 5),
        "conv2_w": u(ks[2], (16, 6, 5, 5), 6 * 5 * 5),
        "conv2_b": u(ks[3], (16,), 6 * 5 * 5),
        "fc1_w": u(ks[4], (120, 400), 400),   # PyTorch Linear: (out, in)
        "fc1_b": u(ks[5], (120,), 400),
        "fc2_w": u(ks[6], (84, 120), 120),
        "fc2_b": u(ks[7], (84,), 120),
        "fc3_w": u(ks[8], (10, 84), 84),
        "fc3_b": u(ks[9], (10,), 84),
    }


def prepare_params(p):
    """One-time reorder / transpose / zero-pad to the layouts the kernels want."""
    def conv_mat(w):
        cout, cin, k, _ = w.shape
        kdim = k * k * cin
        kp = _round_up(kdim, 16)                        # no 128-padding of K
        m = jnp.transpose(w, (2, 3, 1, 0)).reshape(kdim, cout)
        m = jnp.pad(m, ((0, kp - kdim), (0, LANES - cout)))
        return m.astype(jnp.bfloat16)

    def fc_mat(w, kp=None):
        m = w.T                                         # (in, out)
        kin, kout = m.shape
        kp = _round_up(kin, 16) if kp is None else kp
        m = jnp.pad(m, ((0, kp - kin), (0, LANES - kout)))
        return m.astype(jnp.bfloat16)

    def bias(b):
        return jnp.pad(b, (0, LANES - b.shape[0])).reshape(1, LANES).astype(jnp.float32)

    return {
        "conv1_w": conv_mat(p["conv1_w"]), "conv1_b": bias(p["conv1_b"]),   # Kp=80
        "conv2_w": conv_mat(p["conv2_w"]), "conv2_b": bias(p["conv2_b"]),   # Kp=160
        "fc1_w": fc_mat(p["fc1_w"]), "fc1_b": bias(p["fc1_b"]),             # Kp=400
        "fc2_w": fc_mat(p["fc2_w"], LANES), "fc2_b": bias(p["fc2_b"]),      # Kp=128
        "fc3_w": fc_mat(p["fc3_w"], LANES), "fc3_b": bias(p["fc3_b"]),      # Kp=128
    }


# ----------------------------------------------------------------------------
# Net forward
# ----------------------------------------------------------------------------
@jax.jit
def net_forward(prepared, x_nchw):
    # input NCHW (PyTorch convention) -> NHWC internally.
    x = jnp.transpose(x_nchw, (0, 2, 3, 1)).astype(jnp.float32)               # (N,32,32,3)
    x = conv_leaky_pool(x, prepared["conv1_w"], prepared["conv1_b"], 6, 0.2)  # (N,14,14,6) bf16
    x = conv_leaky_pool(x, prepared["conv2_w"], prepared["conv2_b"], 16, 0.2)  # (N,5,5,16) bf16
    # flatten in PyTorch NCHW order: (N, 16, 5, 5) -> (N, 400)
    x = jnp.transpose(x, (0, 3, 1, 2)).reshape(x.shape[0], 16 * 5 * 5)
    return fc_head(x, prepared["fc1_w"], prepared["fc1_b"],
                   prepared["fc2_w"], prepared["fc2_b"],
                   prepared["fc3_w"], prepared["fc3_b"], 10, 0.2)              # (N, 10) f32


if __name__ == "__main__":
    key = jax.random.PRNGKey(0)
    pkey, xkey = jax.random.split(key)
    params = init_params(pkey)
    prepared = prepare_params(params)
    # Spatial 32x32 is required by the module (16*5*5 fc1 input); batch kept small.
    x = jax.random.normal(xkey, (2, 3, 32, 32), dtype=jnp.float32)
    out = net_forward(prepared, x)
    jax.block_until_ready(out)
    assert out.shape == (2, 10)
    assert bool(jnp.all(jnp.isfinite(out)))
    print("KERNEL_OK")
</pallas_src>

<mosaic_0001>
module attributes {stable_mosaic.version = 11 : i64} {
  func.func @_conv_pool_kernel(%arg0: i32, %arg1: memref<4x208x80xbf16, #tpu.memory_space<vmem>>, %arg2: memref<80x128xbf16, #tpu.memory_space<vmem>>, %arg3: memref<1x128xf32, #tpu.memory_space<vmem>>, %arg4: memref<208x128xbf16, #tpu.memory_space<vmem>>) attributes {dimension_semantics = [#tpu.dimension_semantics<parallel>], iteration_bounds = array<i64: 2>, scalar_prefetch = 0 : i64, scratch_operands = 0 : i64, tpu.core_type = #tpu.core_type<tc>, window_params = [{transform_indices = @transform_0, window_bounds = array<i64: 4, 208, 80>}, {pipeline_mode = #tpu.pipeline_mode<synchronous>, transform_indices = @transform_1, window_bounds = array<i64: 80, 128>}, {pipeline_mode = #tpu.pipeline_mode<synchronous>, transform_indices = @transform_2, window_bounds = array<i64: 1, 128>}, {transform_indices = @transform_3, window_bounds = array<i64: 208, 128>}]} {
    %c0 = arith.constant 0 : index
    %c0_0 = arith.constant 0 : index
    %0 = vector.load %arg2[%c0, %c0_0] : memref<80x128xbf16, #tpu.memory_space<vmem>>, vector<80x128xbf16>
    %c0_1 = arith.constant 0 : index
    %c0_2 = arith.constant 0 : index
    %c0_3 = arith.constant 0 : index
    %1 = vector.load %arg1[%c0_1, %c0_2, %c0_3] : memref<4x208x80xbf16, #tpu.memory_space<vmem>>, vector<1x208x80xbf16>
    %2 = vector.shape_cast %1 : vector<1x208x80xbf16> to vector<208x80xbf16>
    %cst = arith.constant dense<0.000000e+00> : vector<208x128xf32>
    %3 = tpu.matmul %2, %0, %cst {dimension_numbers = #tpu.dot_dimension_numbers<[1], [0], [0], [1], [0, 0, 1, 1], [], []>} : vector<208x80xbf16>, vector<80x128xbf16>, vector<208x128xf32> -> vector<208x128xf32>
    %c1 = arith.constant 1 : index
    %c0_4 = arith.constant 0 : index
    %c0_5 = arith.constant 0 : index
    %4 = vector.load %arg1[%c1, %c0_4, %c0_5] : memref<4x208x80xbf16, #tpu.memory_space<vmem>>, vector<1x208x80xbf16>
    %5 = vector.shape_cast %4 : vector<1x208x80xbf16> to vector<208x80xbf16>
    %cst_6 = arith.constant dense<0.000000e+00> : vector<208x128xf32>
    %6 = tpu.matmul %5, %0, %cst_6 {dimension_numbers = #tpu.dot_dimension_numbers<[1], [0], [0], [1], [0, 0, 1, 1], [], []>} : vector<208x80xbf16>, vector<80x128xbf16>, vector<208x128xf32> -> vector<208x128xf32>
    %7 = arith.maximumf %3, %6 : vector<208x128xf32>
    %c2 = arith.constant 2 : index
    %c0_7 = arith.constant 0 : index
    %c0_8 = arith.constant 0 : index
    %8 = vector.load %arg1[%c2, %c0_7, %c0_8] : memref<4x208x80xbf16, #tpu.memory_space<vmem>>, vector<1x208x80xbf16>
    %9 = vector.shape_cast %8 : vector<1x208x80xbf16> to vector<208x80xbf16>
    %cst_9 = arith.constant dense<0.000000e+00> : vector<208x128xf32>
    %10 = tpu.matmul %9, %0, %cst_9 {dimension_numbers = #tpu.dot_dimension_numbers<[1], [0], [0], [1], [0, 0, 1, 1], [], []>} : vector<208x80xbf16>, vector<80x128xbf16>, vector<208x128xf32> -> vector<208x128xf32>
    %11 = arith.maximumf %7, %10 : vector<208x128xf32>
    %c3 = arith.constant 3 : index
    %c0_10 = arith.constant 0 : index
    %c0_11 = arith.constant 0 : index
    %12 = vector.load %arg1[%c3, %c0_10, %c0_11] : memref<4x208x80xbf16, #tpu.memory_space<vmem>>, vector<1x208x80xbf16>
    %13 = vector.shape_cast %12 : vector<1x208x80xbf16> to vector<208x80xbf16>
    %cst_12 = arith.constant dense<0.000000e+00> : vector<208x128xf32>
    %14 = tpu.matmul %13, %0, %cst_12 {dimension_numbers = #tpu.dot_dimension_numbers<[1], [0], [0], [1], [0, 0, 1, 1], [], []>} : vector<208x80xbf16>, vector<80x128xbf16>, vector<208x128xf32> -> vector<208x128xf32>
    %15 = arith.maximumf %11, %14 : vector<208x128xf32>
    %c0_13 = arith.constant 0 : index
    %c0_14 = arith.constant 0 : index
    %16 = vector.load %arg3[%c0_13, %c0_14] : memref<1x128xf32, #tpu.memory_space<vmem>>, vector<1x128xf32>
    %17 = vector.broadcast %16 : vector<1x128xf32> to vector<208x128xf32>
    %18 = arith.addf %15, %17 : vector<208x128xf32>
    %cst_15 = arith.constant 0.000000e+00 : f32
    %19 = vector.broadcast %cst_15 : f32 to vector<208x128xf32>
    %20 = arith.cmpf oge, %18, %19 : vector<208x128xf32>
    %cst_16 = arith.constant 2.000000e-01 : f32
    %21 = vector.broadcast %cst_16 : f32 to vector<208x128xf32>
    %22 = arith.mulf %21, %18 : vector<208x128xf32>
    %23 = arith.select %20, %18, %22 : vector<208x128xi1>, vector<208x128xf32>
    %24 = arith.truncf %23 : vector<208x128xf32> to vector<208x128xbf16>
    %c0_17 = arith.constant 0 : index
    %c0_18 = arith.constant 0 : index
    %25 = vector.load %arg4[%c0_17, %c0_18] : memref<208x128xbf16, #tpu.memory_space<vmem>>, vector<208x128xbf16>
    tpu.vector_store %arg4[%c0_17, %c0_18], %24 {strides = array<i32>} : memref<208x128xbf16, #tpu.memory_space<vmem>>, vector<208x128xbf16>,
    return
  }
  func.func @transform_0(%arg0: i32) -> (i32, i32, i32) {
    %c0_i32 = arith.constant 0 : i32
    %c0_i32_0 = arith.constant 0 : i32
    %c0_i32_1 = arith.constant 0 : i32
    return %c0_i32, %arg0, %c0_i32_0 : i32, i32, i32
  }
  func.func @transform_1(%arg0: i32) -> (i32, i32) {
    %c0_i32 = arith.constant 0 : i32
    %c0_i32_0 = arith.constant 0 : i32
    %c0_i32_1 = arith.constant 0 : i32
    return %c0_i32, %c0_i32_0 : i32, i32
  }
  func.func @transform_2(%arg0: i32) -> (i32, i32) {
    %c0_i32 = arith.constant 0 : i32
    %c0_i32_0 = arith.constant 0 : i32
    %c0_i32_1 = arith.constant 0 : i32
    return %c0_i32, %c0_i32_0 : i32, i32
  }
  func.func @transform_3(%arg0: i32) -> (i32, i32) {
    %c0_i32 = arith.constant 0 : i32
    %c0_i32_0 = arith.constant 0 : i32
    return %arg0, %c0_i32 : i32, i32
  }
}

module attributes {stable_mosaic.version = 11 : i64} {
  func.func @_conv_pool_kernel(%arg0: i32, %arg1: memref<4x32x160xbf16, #tpu.memory_space<vmem>>, %arg2: memref<160x128xbf16, #tpu.memory_space<vmem>>, %arg3: memref<1x128xf32, #tpu.memory_space<vmem>>, %arg4: memref<32x128xbf16, #tpu.memory_space<vmem>>) attributes {dimension_semantics = [#tpu.dimension_semantics<parallel>], iteration_bounds = array<i64: 2>, scalar_prefetch = 0 : i64, scratch_operands = 0 : i64, tpu.core_type = #tpu.core_type<tc>, window_params = [{transform_indices = @transform_0, window_bounds = array<i64: 4, 32, 160>}, {pipeline_mode = #tpu.pipeline_mode<synchronous>, transform_indices = @transform_1, window_bounds = array<i64: 160, 128>}, {pipeline_mode = #tpu.pipeline_mode<synchronous>, transform_indices = @transform_2, window_bounds = array<i64: 1, 128>}, {transform_indices = @transform_3, window_bounds = array<i64: 32, 128>}]} {
    %c0 = arith.constant 0 : index
    %c0_0 = arith.constant 0 : index
    %0 = vector.load %arg2[%c0, %c0_0] : memref<160x128xbf16, #tpu.memory_space<vmem>>, vector<160x128xbf16>
    %c0_1 = arith.constant 0 : index
    %c0_2 = arith.constant 0 : index
    %c0_3 = arith.constant 0 : index
    %1 = vector.load %arg1[%c0_1, %c0_2, %c0_3] : memref<4x32x160xbf16, #tpu.memory_space<vmem>>, vector<1x32x160xbf16>
    %2 = vector.shape_cast %1 : vector<1x32x160xbf16> to vector<32x160xbf16>
    %cst = arith.constant dense<0.000000e+00> : vector<32x128xf32>
    %3 = tpu.matmul %2, %0, %cst {dimension_numbers = #tpu.dot_dimension_numbers<[1], [0], [0], [1], [0, 0, 1, 1], [], []>} : vector<32x160xbf16>, vector<160x128xbf16>, vector<32x128xf32> -> vector<32x128xf32>
    %c1 = arith.constant 1 : index
    %c0_4 = arith.constant 0 : index
    %c0_5 = arith.constant 0 : index
    %4 = vector.load %arg1[%c1, %c0_4, %c0_5] : memref<4x32x160xbf16, #tpu.memory_space<vmem>>, vector<1x32x160xbf16>
    %5 = vector.shape_cast %4 : vector<1x32x160xbf16> to vector<32x160xbf16>
    %cst_6 = arith.constant dense<0.000000e+00> : vector<32x128xf32>
    %6 = tpu.matmul %5, %0, %cst_6 {dimension_numbers = #tpu.dot_dimension_numbers<[1], [0], [0], [1], [0, 0, 1, 1], [], []>} : vector<32x160xbf16>, vector<160x128xbf16>, vector<32x128xf32> -> vector<32x128xf32>
    %7 = arith.maximumf %3, %6 : vector<32x128xf32>
    %c2 = arith.constant 2 : index
    %c0_7 = arith.constant 0 : index
    %c0_8 = arith.constant 0 : index
    %8 = vector.load %arg1[%c2, %c0_7, %c0_8] : memref<4x32x160xbf16, #tpu.memory_space<vmem>>, vector<1x32x160xbf16>
    %9 = vector.shape_cast %8 : vector<1x32x160xbf16> to vector<32x160xbf16>
    %cst_9 = arith.constant dense<0.000000e+00> : vector<32x128xf32>
    %10 = tpu.matmul %9, %0, %cst_9 {dimension_numbers = #tpu.dot_dimension_numbers<[1], [0], [0], [1], [0, 0, 1, 1], [], []>} : vector<32x160xbf16>, vector<160x128xbf16>, vector<32x128xf32> -> vector<32x128xf32>
    %11 = arith.maximumf %7, %10 : vector<32x128xf32>
    %c3 = arith.constant 3 : index
    %c0_10 = arith.constant 0 : index
    %c0_11 = arith.constant 0 : index
    %12 = vector.load %arg1[%c3, %c0_10, %c0_11] : memref<4x32x160xbf16, #tpu.memory_space<vmem>>, vector<1x32x160xbf16>
    %13 = vector.shape_cast %12 : vector<1x32x160xbf16> to vector<32x160xbf16>
    %cst_12 = arith.constant dense<0.000000e+00> : vector<32x128xf32>
    %14 = tpu.matmul %13, %0, %cst_12 {dimension_numbers = #tpu.dot_dimension_numbers<[1], [0], [0], [1], [0, 0, 1, 1], [], []>} : vector<32x160xbf16>, vector<160x128xbf16>, vector<32x128xf32> -> vector<32x128xf32>
    %15 = arith.maximumf %11, %14 : vector<32x128xf32>
    %c0_13 = arith.constant 0 : index
    %c0_14 = arith.constant 0 : index
    %16 = vector.load %arg3[%c0_13, %c0_14] : memref<1x128xf32, #tpu.memory_space<vmem>>, vector<1x128xf32>
    %17 = vector.broadcast %16 : vector<1x128xf32> to vector<32x128xf32>
    %18 = arith.addf %15, %17 : vector<32x128xf32>
    %cst_15 = arith.constant 0.000000e+00 : f32
    %19 = vector.broadcast %cst_15 : f32 to vector<32x128xf32>
    %20 = arith.cmpf oge, %18, %19 : vector<32x128xf32>
    %cst_16 = arith.constant 2.000000e-01 : f32
    %21 = vector.broadcast %cst_16 : f32 to vector<32x128xf32>
    %22 = arith.mulf %21, %18 : vector<32x128xf32>
    %23 = arith.select %20, %18, %22 : vector<32x128xi1>, vector<32x128xf32>
    %24 = arith.truncf %23 : vector<32x128xf32> to vector<32x128xbf16>
    %c0_17 = arith.constant 0 : index
    %c0_18 = arith.constant 0 : index
    %25 = vector.load %arg4[%c0_17, %c0_18] : memref<32x128xbf16, #tpu.memory_space<vmem>>, vector<32x128xbf16>
    tpu.vector_store %arg4[%c0_17, %c0_18], %24 {strides = array<i32>} : memref<32x128xbf16, #tpu.memory_space<vmem>>, vector<32x128xbf16>,
    return
  }
  func.func @transform_0(%arg0: i32) -> (i32, i32, i32) {
    %c0_i32 = arith.constant 0 : i32
    %c0_i32_0 = arith.constant 0 : i32
    %c0_i32_1 = arith.constant 0 : i32
    return %c0_i32, %arg0, %c0_i32_0 : i32, i32, i32
  }
  func.func @transform_1(%arg0: i32) -> (i32, i32) {
    %c0_i32 = arith.constant 0 : i32
    %c0_i32_0 = arith.constant 0 : i32
    %c0_i32_1 = arith.constant 0 : i32
    return %c0_i32, %c0_i32_0 : i32, i32
  }
  func.func @transform_2(%arg0: i32) -> (i32, i32) {
    %c0_i32 = arith.constant 0 : i32
    %c0_i32_0 = arith.constant 0 : i32
    %c0_i32_1 = arith.constant 0 : i32
    return %c0_i32, %c0_i32_0 : i32, i32
  }
  func.func @transform_3(%arg0: i32) -> (i32, i32) {
    %c0_i32 = arith.constant 0 : i32
    %c0_i32_0 = arith.constant 0 : i32
    return %arg0, %c0_i32 : i32, i32
  }
}

module attributes {stable_mosaic.version = 11 : i64} {
  func.func @_fc_head_kernel(%arg0: i32, %arg1: memref<16x400xbf16, #tpu.memory_space<vmem>>, %arg2: memref<400x128xbf16, #tpu.memory_space<vmem>>, %arg3: memref<1x128xf32, #tpu.memory_space<vmem>>, %arg4: memref<128x128xbf16, #tpu.memory_space<vmem>>, %arg5: memref<1x128xf32, #tpu.memory_space<vmem>>, %arg6: memref<128x128xbf16, #tpu.memory_space<vmem>>, %arg7: memref<1x128xf32, #tpu.memory_space<vmem>>, %arg8: memref<16x128xf32, #tpu.memory_space<vmem>>) attributes {dimension_semantics = [#tpu.dimension_semantics<parallel>], iteration_bounds = array<i64: 1>, scalar_prefetch = 0 : i64, scratch_operands = 0 : i64, tpu.core_type = #tpu.core_type<tc>, window_params = [{transform_indices = @transform_0, window_bounds = array<i64: 16, 400>}, {pipeline_mode = #tpu.pipeline_mode<synchronous>, transform_indices = @transform_1, window_bounds = array<i64: 400, 128>}, {pipeline_mode = #tpu.pipeline_mode<synchronous>, transform_indices = @transform_2, window_bounds = array<i64: 1, 128>}, {pipeline_mode = #tpu.pipeline_mode<synchronous>, transform_indices = @transform_3, window_bounds = array<i64: 128, 128>}, {pipeline_mode = #tpu.pipeline_mode<synchronous>, transform_indices = @transform_4, window_bounds = array<i64: 1, 128>}, {pipeline_mode = #tpu.pipeline_mode<synchronous>, transform_indices = @transform_5, window_bounds = array<i64: 128, 128>}, {pipeline_mode = #tpu.pipeline_mode<synchronous>, transform_indices = @transform_6, window_bounds = array<i64: 1, 128>}, {transform_indices = @transform_7, window_bounds = array<i64: 16, 128>}]} {
    %c0 = arith.constant 0 : index
    %c0_0 = arith.constant 0 : index
    %0 = vector.load %arg1[%c0, %c0_0] : memref<16x400xbf16, #tpu.memory_space<vmem>>, vector<16x400xbf16>
    %c0_1 = arith.constant 0 : index
    %c0_2 = arith.constant 0 : index
    %1 = vector.load %arg2[%c0_1, %c0_2] : memref<400x128xbf16, #tpu.memory_space<vmem>>, vector<400x128xbf16>
    %cst = arith.constant dense<0.000000e+00> : vector<16x128xf32>
    %2 = tpu.matmul %0, %1, %cst {dimension_numbers = #tpu.dot_dimension_numbers<[1], [0], [0], [1], [0, 0, 1, 1], [], []>} : vector<16x400xbf16>, vector<400x128xbf16>, vector<16x128xf32> -> vector<16x128xf32>
    %c0_3 = arith.constant 0 : index
    %c0_4 = arith.constant 0 : index
    %3 = vector.load %arg3[%c0_3, %c0_4] : memref<1x128xf32, #tpu.memory_space<vmem>>, vector<1x128xf32>
    %4 = vector.broadcast %3 : vector<1x128xf32> to vector<16x128xf32>
    %5 = arith.addf %2, %4 : vector<16x128xf32>
    %cst_5 = arith.constant 0.000000e+00 : f32
    %6 = vector.broadcast %cst_5 : f32 to vector<16x128xf32>
    %7 = arith.cmpf oge, %5, %6 : vector<16x128xf32>
    %cst_6 = arith.constant 2.000000e-01 : f32
    %8 = vector.broadcast %cst_6 : f32 to vector<16x128xf32>
    %9 = arith.mulf %8, %5 : vector<16x128xf32>
    %10 = arith.select %7, %5, %9 : vector<16x128xi1>, vector<16x128xf32>
    %11 = arith.truncf %10 : vector<16x128xf32> to vector<16x128xbf16>
    %c0_7 = arith.constant 0 : index
    %c0_8 = arith.constant 0 : index
    %12 = vector.load %arg4[%c0_7, %c0_8] : memref<128x128xbf16, #tpu.memory_space<vmem>>, vector<128x128xbf16>
    %cst_9 = arith.constant dense<0.000000e+00> : vector<16x128xf32>
    %13 = tpu.matmul %11, %12, %cst_9 {dimension_numbers = #tpu.dot_dimension_numbers<[1], [0], [0], [1], [0, 0, 1, 1], [], []>} : vector<16x128xbf16>, vector<128x128xbf16>, vector<16x128xf32> -> vector<16x128xf32>
    %c0_10 = arith.constant 0 : index
    %c0_11 = arith.constant 0 : index
    %14 = vector.load %arg5[%c0_10, %c0_11] : memref<1x128xf32, #tpu.memory_space<vmem>>, vector<1x128xf32>
    %15 = vector.broadcast %14 : vector<1x128xf32> to vector<16x128xf32>
    %16 = arith.addf %13, %15 : vector<16x128xf32>
    %cst_12 = arith.constant 0.000000e+00 : f32
    %17 = vector.broadcast %cst_12 : f32 to vector<16x128xf32>
    %18 = arith.cmpf oge, %16, %17 : vector<16x128xf32>
    %cst_13 = arith.constant 2.000000e-01 : f32
    %19 = vector.broadcast %cst_13 : f32 to vector<16x128xf32>
    %20 = arith.mulf %19, %16 : vector<16x128xf32>
    %21 = arith.select %18, %16, %20 : vector<16x128xi1>, vector<16x128xf32>
    %22 = arith.truncf %21 : vector<16x128xf32> to vector<16x128xbf16>
    %c0_14 = arith.constant 0 : index
    %c0_15 = arith.constant 0 : index
    %23 = vector.load %arg6[%c0_14, %c0_15] : memref<128x128xbf16, #tpu.memory_space<vmem>>, vector<128x128xbf16>
    %cst_16 = arith.constant dense<0.000000e+00> : vector<16x128xf32>
    %24 = tpu.matmul %22, %23, %cst_16 {dimension_numbers = #tpu.dot_dimension_numbers<[1], [0], [0], [1], [0, 0, 1, 1], [], []>} : vector<16x128xbf16>, vector<128x128xbf16>, vector<16x128xf32> -> vector<16x128xf32>
    %c0_17 = arith.constant 0 : index
    %c0_18 = arith.constant 0 : index
    %25 = vector.load %arg7[%c0_17, %c0_18] : memref<1x128xf32, #tpu.memory_space<vmem>>, vector<1x128xf32>
    %26 = vector.broadcast %25 : vector<1x128xf32> to vector<16x128xf32>
    %27 = arith.addf %24, %26 : vector<16x128xf32>
    %c0_19 = arith.constant 0 : index
    %c0_20 = arith.constant 0 : index
    %28 = vector.load %arg8[%c0_19, %c0_20] : memref<16x128xf32, #tpu.memory_space<vmem>>, vector<16x128xf32>
    tpu.vector_store %arg8[%c0_19, %c0_20], %27 {strides = array<i32>} : memref<16x128xf32, #tpu.memory_space<vmem>>, vector<16x128xf32>,
    return
  }
  func.func @transform_0(%arg0: i32) -> (i32, i32) {
    %c0_i32 = arith.constant 0 : i32
    %c0_i32_0 = arith.constant 0 : i32
    return %arg0, %c0_i32 : i32, i32
  }
  func.func @transform_1(%arg0: i32) -> (i32, i32) {
    %c0_i32 = arith.constant 0 : i32
    %c0_i32_0 = arith.constant 0 : i32
    %c0_i32_1 = arith.constant 0 : i32
    return %c0_i32, %c0_i32_0 : i32, i32
  }
  func.func @transform_2(%arg0: i32) -> (i32, i32) {
    %c0_i32 = arith.constant 0 : i32
    %c0_i32_0 = arith.constant 0 : i32
    %c0_i32_1 = arith.constant 0 : i32
    return %c0_i32, %c0_i32_0 : i32, i32
  }
  func.func @transform_3(%arg0: i32) -> (i32, i32) {
    %c0_i32 = arith.constant 0 : i32
    %c0_i32_0 = arith.constant 0 : i32
    %c0_i32_1 = arith.constant 0 : i32
    return %c0_i32, %c0_i32_0 : i32, i32
  }
  func.func @transform_4(%arg0: i32) -> (i32, i32) {
    %c0_i32 = arith.constant 0 : i32
    %c0_i32_0 = arith.constant 0 : i32
    %c0_i32_1 = arith.constant 0 : i32
    return %c0_i32, %c0_i32_0 : i32, i32
  }
  func.func @transform_5(%arg0: i32) -> (i32, i32) {
    %c0_i32 = arith.constant 0 : i32
    %c0_i32_0 = arith.constant 0 : i32
    %c0_i32_1 = arith.constant 0 : i32
    return %c0_i32, %c0_i32_0 : i32, i32
  }
  func.func @transform_6(%arg0: i32) -> (i32, i32) {
    %c0_i32 = arith.constant 0 : i32
    %c0_i32_0 = arith.constant 0 : i32
    %c0_i32_1 = arith.constant 0 : i32
    return %c0_i32, %c0_i32_0 : i32, i32
  }
  func.func @transform_7(%arg0: i32) -> (i32, i32) {
    %c0_i32 = arith.constant 0 : i32
    %c0_i32_0 = arith.constant 0 : i32
    return %arg0, %c0_i32 : i32, i32
  }
}

</mosaic_0001>

<bundles_post_ra>
// kernel: net_forward.3
= control target key start
LH: loop header
LB: loop body
LE: loop exit
PB: predicated region body
PF: predicated region fallthrough
CT: control target
= control target key end

     0   :  { %s2899_s12 = smov 0   ;;  %s2901_s13 = smov 0   ;;  %s3584_s0 = inlined_call_operand.vmem [shape: bf16[4,416,80], index: 0, kind: input, shape index: {}]   ;;  %s3585_s1 = inlined_call_operand.vmem [shape: bf16[80,128], index: 1, kind: input, shape index: {}]   ;;  %s3586_s2 = inlined_call_operand.vmem [shape: f32[1,128], index: 2, kind: input, shape index: {}]   ;;  %s3587_s3 = inlined_call_operand.vmem [shape: bf16[416,128], index: 3, kind: output, shape index: {}]  }
   0x1   :  { %s2903_s14 = smov 0  }
   0x2 LB: > { %s2121_s15 = sadd.s32 4294967295, %s2875_s14   ;;  %s2916_s16 = sadd.s32 1, %s2875_s14   ;;  %s2875_s14 = sphi %s2903_s14, %s3623_s14   ;;  %s2871_s13 = sphi %s2901_s13, %s3622_s13   ;;  %s2867_s12 = sphi %s2899_s12, %s3621_s12  }
   0x3   : > { %s17_s17 = ssub.s32 %s2875_s14, %s2916_s16  ;;  %s20_s18 = sadd.s32 1, %s2871_s13 }
   0x4   : > { %p18_p0 = scmp.eq.s32.totalorder %s17_s17, 0  ;;  %p27_p1 = scmp.ne.s32.totalorder %s2871_s13, %s2867_s12 }
   0x5   : > { %p28_p2 = scmp.eq.s32.totalorder %s2875_s14, 0  ;;  %p2124_p4 = scmp.ge.s32.totalorder %s2875_s14, 2 }
   0x6   : > { %s2925_s19 = scalar_select %p18_p0, %s2871_s13, %s20_s18  }
   0x7   : > { %p29_p3 = por %p28_p2, %p27_p1  ;;  %127 = sbr.rel (%p2124_p4) target bundleno = 45 (0x2d), region = 24 }
   0xe   : > { %130 = sbr.rel (!%p29_p3) target bundleno = 45 (0x2d), region = 28  ;;  %s132_s20 = sand.u32 (%p29_p3), 1, %s2871_s13  }
   0xf   : > { %s2344_s21 = smul.u32 (%p29_p3), 104, %s2875_s14 }
  0x10   : > { %s2768_s22 = smul.u32 (%p29_p3), 416, %s132_s20 }
  0x11   : > { %s2933_s25 = scalar_lea.vmem (%p29_p3), %s3584_s0, %s2344_s21 }
  0x12   : > { %v153_v0 = vld [vmem:[%s2933_s25] sm:$0xff] (%p29_p3)   ;;  %v157_v1 = vld [vmem:[%s2933_s25 + $0x8] sm:$0xff] (%p29_p3)   ;;  %v161_v2 = vld [vmem:[%s2933_s25 + $0x10] sm:$0xff] (%p29_p3)   ;;  %s2938_s26 = scalar_lea.vmem (%p29_p3), [#allocation2], %s2768_s22 }
  0x13   : > { %154 = vst [vmem:[%s2938_s26] sm:$0xff] (%p29_p3), %v153_v0   ;;  %158 = vst [vmem:[%s2938_s26 + $0x8] sm:$0xff] (%p29_p3), %v157_v1   ;;  %v165_v3 = vld [vmem:[%s2933_s25 + $0x18] sm:$0xff] (%p29_p3)   ;;  %v169_v4 = vld [vmem:[%s2933_s25 + $0x20] sm:$0xff] (%p29_p3)  }
  0x14   : > { %162 = vst [vmem:[%s2938_s26 + $0x10] sm:$0xff] (%p29_p3), %v161_v2   ;;  %v173_v5 = vld [vmem:[%s2933_s25 + $0x28] sm:$0xff] (%p29_p3)   ;;  %166 = vst [vmem:[%s2938_s26 + $0x18] sm:$0xff] (%p29_p3), %v165_v3   ;;  %v177_v6 = vld [vmem:[%s2933_s25 + $0x30] sm:$0xff] (%p29_p3)  }
  0x15   : > { %170 = vst [vmem:[%s2938_s26 + $0x20] sm:$0xff] %v169_v4   ;;  %174 = vst [vmem:[%s2938_s26 + $0x28] sm:$0xff] %v173_v5   ;;  %v181_v7 = vld [vmem:[%s2933_s25 + $0x38] sm:$0xff]   ;;  %v185_v8 = vld [vmem:[%s2933_s25 + $0x40] sm:$0xff]  }
  0x16   : > { %178 = vst [vmem:[%s2938_s26 + $0x30] sm:$0xff] %v177_v6   ;;  %182 = vst [vmem:[%s2938_s26 + $0x38] sm:$0xff] %v181_v7   ;;  %v189_v9 = vld [vmem:[%s2933_s25 + $0x48] sm:$0xff]   ;;  %v193_v10 = vld [vmem:[%s2933_s25 + $0x50] sm:$0xff]  }
  0x17   : > { %186 = vst [vmem:[%s2938_s26 + $0x40] sm:$0xff] %v185_v8   ;;  %v197_v11 = vld [vmem:[%s2933_s25 + $0x58] sm:$0xff]   ;;  %190 = vst [vmem:[%s2938_s26 + $0x48] sm:$0xff] %v189_v9   ;;  %v201_v12 = vld [vmem:[%s2933_s25 + $0x60] sm:$0xff]  }
  0x18   : > { %194 = vst [vmem:[%s2938_s26 + $0x50] sm:$0xff] %v193_v10   ;;  %198 = vst [vmem:[%s2938_s26 + $0x58] sm:$0xff] %v197_v11   ;;  %v205_v13 = vld [vmem:[%s2933_s25 + $0xd0] sm:$0xff]   ;;  %v209_v14 = vld [vmem:[%s2933_s25 + $0xd8] sm:$0xff]  }
  0x19   : > { %202 = vst [vmem:[%s2938_s26 + $0x60] sm:$0xff] %v201_v12   ;;  %206 = vst [vmem:[%s2938_s26 + $0x68] sm:$0xff] %v205_v13   ;;  %v213_v15 = vld [vmem:[%s2933_s25 + $0xe0] sm:$0xff]   ;;  %v217_v16 = vld [vmem:[%s2933_s25 + $0xe8] sm:$0xff]  }
  0x1a   : > { %210 = vst [vmem:[%s2938_s26 + $0x70] sm:$0xff] %v209_v14   ;;  %v221_v17 = vld [vmem:[%s2933_s25 + $0xf0] sm:$0xff]   ;;  %214 = vst [vmem:[%s2938_s26 + $0x78] sm:$0xff] %v213_v15   ;;  %v225_v18 = vld [vmem:[%s2933_s25 + $0xf8] sm:$0xff]  }
  0x1b   : > { %218 = vst [vmem:[%s2938_s26 + $0x80] sm:$0xff] %v217_v16   ;;  %222 = vst [vmem:[%s2938_s26 + $0x88] sm:$0xff] %v221_v17   ;;  %v229_v19 = vld [vmem:[%s2933_s25 + $0x100] sm:$0xff]   ;;  %v233_v20 = vld [vmem:[%s2933_s25 + $0x108] sm:$0xff]  }
  0x1c   : > { %226 = vst [vmem:[%s2938_s26 + $0x90] sm:$0xff] %v225_v18   ;;  %230 = vst [vmem:[%s2938_s26 + $0x98] sm:$0xff] %v229_v19   ;;  %v237_v21 = vld [vmem:[%s2933_s25 + $0x110] sm:$0xff]   ;;  %v241_v22 = vld [vmem:[%s2933_s25 + $0x118] sm:$0xff]  }
  0x1d   : > { %234 = vst [vmem:[%s2938_s26 + $0xa0] sm:$0xff] %v233_v20   ;;  %v245_v23 = vld [vmem:[%s2933_s25 + $0x120] sm:$0xff]   ;;  %238 = vst [vmem:[%s2938_s26 + $0xa8] sm:$0xff] %v237_v21   ;;  %v249_v24 = vld [vmem:[%s2933_s25 + $0x128] sm:$0xff]  }
  0x1e   : > { %242 = vst [vmem:[%s2938_s26 + $0xb0] sm:$0xff] %v241_v22   ;;  %246 = vst [vmem:[%s2938_s26 + $0xb8] sm:$0xff] %v245_v23   ;;  %v253_v25 = vld [vmem:[%s2933_s25 + $0x130] sm:$0xff]   ;;  %v257_v26 = vld [vmem:[%s2933_s25 + $0x1a0] sm:$0xff]  }
  0x1f   : > { %250 = vst [vmem:[%s2938_s26 + $0xc0] sm:$0xff] %v249_v24   ;;  %254 = vst [vmem:[%s2938_s26 + $0xc8] sm:$0xff] %v253_v25   ;;  %v261_v27 = vld [vmem:[%s2933_s25 + $0x1a8] sm:$0xff]   ;;  %v265_v28 = vld [vmem:[%s2933_s25 + $0x1b0] sm:$0xff]  }
  0x20   : > { %258 = vst [vmem:[%s2938_s26 + $0xd0] sm:$0xff] %v257_v26   ;;  %v269_v29 = vld [vmem:[%s2933_s25 + $0x1b8] sm:$0xff]   ;;  %262 = vst [vmem:[%s2938_s26 + $0xd8] sm:$0xff] %v261_v27   ;;  %v273_v30 = vld [vmem:[%s2933_s25 + $0x1c0] sm:$0xff]  }
  0x21   : > { %266 = vst [vmem:[%s2938_s26 + $0xe0] sm:$0xff] %v265_v28   ;;  %270 = vst [vmem:[%s2938_s26 + $0xe8] sm:$0xff] %v269_v29   ;;  %v277_v31 = vld [vmem:[%s2933_s25 + $0x1c8] sm:$0xff]   ;;  %v281_v32 = vld [vmem:[%s2933_s25 + $0x1d0] sm:$0xff]  }
  0x22   : > { %274 = vst [vmem:[%s2938_s26 + $0xf0] sm:$0xff] %v273_v30   ;;  %278 = vst [vmem:[%s2938_s26 + $0xf8] sm:$0xff] %v277_v31   ;;  %v285_v33 = vld [vmem:[%s2933_s25 + $0x1d8] sm:$0xff]   ;;  %v289_v34 = vld [vmem:[%s2933_s25 + $0x1e0] sm:$0xff]  }
  0x23   : > { %282 = vst [vmem:[%s2938_s26 + $0x100] sm:$0xff] %v281_v32   ;;  %v293_v35 = vld [vmem:[%s2933_s25 + $0x1e8] sm:$0xff]   ;;  %286 = vst [vmem:[%s2938_s26 + $0x108] sm:$0xff] %v285_v33   ;;  %v297_v36 = vld [vmem:[%s2933_s25 + $0x1f0] sm:$0xff]  }
  0x24   : > { %290 = vst [vmem:[%s2938_s26 + $0x110] sm:$0xff] %v289_v34   ;;  %294 = vst [vmem:[%s2938_s26 + $0x118] sm:$0xff] %v293_v35   ;;  %v301_v37 = vld [vmem:[%s2933_s25 + $0x1f8] sm:$0xff]   ;;  %v305_v38 = vld [vmem:[%s2933_s25 + $0x200] sm:$0xff]  }
  0x25   : > { %298 = vst [vmem:[%s2938_s26 + $0x120] sm:$0xff] %v297_v36   ;;  %302 = vst [vmem:[%s2938_s26 + $0x128] sm:$0xff] %v301_v37   ;;  %v309_v39 = vld [vmem:[%s2933_s25 + $0x270] sm:$0xff]   ;;  %v313_v40 = vld [vmem:[%s2933_s25 + $0x278] sm:$0xff]  }
  0x26   : > { %306 = vst [vmem:[%s2938_s26 + $0x130] sm:$0xff] %v305_v38   ;;  %v317_v41 = vld [vmem:[%s2933_s25 + $0x280] sm:$0xff]   ;;  %310 = vst [vmem:[%s2938_s26 + $0x138] sm:$0xff] %v309_v39   ;;  %v321_v42 = vld [vmem:[%s2933_s25 + $0x288] sm:$0xff]  }
  0x27   : > { %314 = vst [vmem:[%s2938_s26 + $0x140] sm:$0xff] %v313_v40   ;;  %318 = vst [vmem:[%s2938_s26 + $0x148] sm:$0xff] %v317_v41   ;;  %v325_v43 = vld [vmem:[%s2933_s25 + $0x290] sm:$0xff]   ;;  %v329_v44 = vld [vmem:[%s2933_s25 + $0x298] sm:$0xff]  }
  0x28   : > { %322 = vst [vmem:[%s2938_s26 + $0x150] sm:$0xff] %v321_v42   ;;  %326 = vst [vmem:[%s2938_s26 + $0x158] sm:$0xff] %v325_v43   ;;  %v333_v45 = vld [vmem:[%s2933_s25 + $0x2a0] sm:$0xff]   ;;  %v337_v46 = vld [vmem:[%s2933_s25 + $0x2a8] sm:$0xff]  }
  0x29   : > { %330 = vst [vmem:[%s2938_s26 + $0x160] sm:$0xff] %v329_v44   ;;  %v341_v47 = vld [vmem:[%s2933_s25 + $0x2b0] sm:$0xff]   ;;  %334 = vst [vmem:[%s2938_s26 + $0x168] sm:$0xff] %v333_v45   ;;  %v345_v48 = vld [vmem:[%s2933_s25 + $0x2b8] sm:$0xff]  }
  0x2a   : > { %338 = vst [vmem:[%s2938_s26 + $0x170] sm:$0xff] %v337_v46   ;;  %342 = vst [vmem:[%s2938_s26 + $0x178] sm:$0xff] %v341_v47   ;;  %v349_v49 = vld [vmem:[%s2933_s25 + $0x2c0] sm:$0xff]   ;;  %v353_v50 = vld [vmem:[%s2933_s25 + $0x2c8] sm:$0xff]  }
  0x2b   : > { %346 = vst [vmem:[%s2938_s26 + $0x180] sm:$0xff] %v345_v48   ;;  %350 = vst [vmem:[%s2938_s26 + $0x188] sm:$0xff] %v349_v49   ;;  %v357_v51 = vld [vmem:[%s2933_s25 + $0x2d0] sm:$0xff]  }
  0x2c   : > { %354 = vst [vmem:[%s2938_s26 + $0x190] sm:$0xff] %v353_v50   ;;  %358 = vst [vmem:[%s2938_s26 + $0x198] sm:$0xff] %v357_v51  }
  0x2d PF: > { %p2126_p5 = scmp.ge.s32.totalorder %s2875_s14, 1  ;;  %p590_p6 = scmp.lt.s32.totalorder %s2875_s14, 3 }
  0x2f   : > { %p591_p7 = pnand %p2126_p5, %p590_p6 }
  0x31   : > { %594 = sbr.rel (%p591_p7) target bundleno = 503 (0x1f7), region = 69 }
  0x38   : > { %v2796_v52 = vld [vmem:[%s3585_s1] sm:$0xff]   ;;  %v2877_v53 = vmov 0.0   ;;  %v2797_v54 = vld [vmem:[%s3585_s1 + $0x8] sm:$0xff]   ;;  %s597_s4 = sand.u32 1, %s2867_s12   ;;  %vm2878_vm0 = vmmov 0   ;;  %v2798_v55 = vld [vmem:[%s3585_s1 + $0x10] sm:$0xff]  }
  0x39   : > { %2520 = vmatprep.subr.bf16.mxu0 %v2877_v53  ;;  %2582 = vmatprep.subr.bf16.mxu1 %v2877_v53  ;;  %s2769_s5 = smul.u32 416, %s597_s4  ;;  %v2799_v56 = vld [vmem:[%s3585_s1 + $0x18] sm:$0xff]   ;;  %v2800_v57 = vld [vmem:[%s3585_s1 + $0x20] sm:$0xff]   ;;  %vm759_vm1 = vcmask 654336  }
  0x3a   : > { %2521 = vmatpush3.bf16.msra.mxu0 %v2796_v52  ;;  %2583 = vmatpush3.bf16.msra.mxu1 %v2796_v52  ;;  %s621_s17 = smul.u32 26, %s2121_s15 }
  0x3b   : > { %2522 = vmatprep.subr.bf16.mxu0 %v2877_v53  ;;  %2584 = vmatprep.subr.bf16.mxu1 %v2877_v53  ;;  %s3061_s8 = scalar_lea.vmem [#allocation2], %s2769_s5 }
  0x3c   : > { %2530 = vmatprep.mubr.msk.bf16.mxu0 %vm2878_vm0, %v2877_v53  ;;  %2592 = vmatprep.mubr.msk.bf16.mxu1 %vm2878_vm0, %v2877_v53  ;;  %v2801_v58 = vld [vmem:[%s3061_s8] sm:$0xff]   ;;  %v2802_v59 = vld [vmem:[%s3061_s8 + $0x68] sm:$0xff]   ;;  %v2804_v61 = vld [vmem:[%s3061_s8 + $0x70] sm:$0xff]   ;;  %p622_p8 = scmp.lt.s32.totalorder %s621_s17, 51 }
  0x3d   : > { %v2803_v60 = vld [vmem:[%s3061_s8 + $0x8] sm:$0xff]   ;;  %v2805_v62 = vld [vmem:[%s3061_s8 + $0x10] sm:$0xff]   ;;  %v2806_v63 = vld [vmem:[%s3061_s8 + $0x78] sm:$0xff]  }
  0x3e   : > { %2523 = vmatpush3.bf16.msra.mxu0 %v2797_v54  ;;  %2585 = vmatpush3.bf16.msra.mxu1 %v2797_v54  ;;  %v2807_v0 = vld [vmem:[%s3061_s8 + $0x18] sm:$0xff]   ;;  %v2808_v1 = vld [vmem:[%s3061_s8 + $0x80] sm:$0xff]   ;;  %v2810_v3 = vld [vmem:[%s3061_s8 + $0x88] sm:$0xff]   ;;  %s3625_s17 = smov (!%p622_p8, %s621_s17), 51 }
  0x3f   : > { %2524 = vmatprep.subr.bf16.mxu0 %v2877_v53  ;;  %2586 = vmatprep.subr.bf16.mxu1 %v2877_v53  ;;  %v2809_v2 = vld [vmem:[%s3061_s8 + $0x20] sm:$0xff]   ;;  %v2811_v4 = vld [vmem:[%s3061_s8 + $0x28] sm:$0xff]   ;;  %v2812_v5 = vld [vmem:[%s3061_s8 + $0x90] sm:$0xff]   ;;  %s2127_s14 = sshll.u32 %s3625_s17, 2 }
  0x40   : > { %v2813_v6 = vld [vmem:[%s3061_s8 + $0x30] sm:$0xff]   ;;  %v2814_v7 = vld [vmem:[%s3061_s8 + $0x98] sm:$0xff]   ;;  %v2816_v9 = vld [vmem:[%s3061_s8 + $0xa0] sm:$0xff]   ;;  %s3466_s22 = scalar_lea.vmem %s3587_s3, %s2127_s14 }
  0x41   : > { %v2815_v8 = vld [vmem:[%s3061_s8 + $0x38] sm:$0xff]   ;;  %v2817_v10 = vld [vmem:[%s3061_s8 + $0x40] sm:$0xff]   ;;  %v2818_v11 = vld [vmem:[%s3061_s8 + $0xa8] sm:$0xff]  }
  0x42   : > { %2525 = vmatpush3.bf16.msra.mxu0 %v2798_v55  ;;  %2587 = vmatpush3.bf16.msra.mxu1 %v2798_v55  ;;  %v2819_v12 = vld [vmem:[%s3061_s8 + $0x48] sm:$0xff]   ;;  %v2820_v13 = vld [vmem:[%s3061_s8 + $0xb0] sm:$0xff]   ;;  %v2822_v15 = vld [vmem:[%s3061_s8 + $0xb8] sm:$0xff]  }
  0x43   : > { %2526 = vmatprep.subr.bf16.mxu0 %v2877_v53  ;;  %2588 = vmatprep.subr.bf16.mxu1 %v2877_v53  ;;  %v2821_v14 = vld [vmem:[%s3061_s8 + $0x50] sm:$0xff]   ;;  %v2823_v16 = vld [vmem:[%s3061_s8 + $0x58] sm:$0xff]   ;;  %v2824_v17 = vld [vmem:[%s3061_s8 + $0xc0] sm:$0xff]  }
  0x44   : > { %v2825_v18 = vld [vmem:[%s3061_s8 + $0x60] sm:$0xff]   ;;  %v2826_v19 = vld [vmem:[%s3061_s8 + $0xc8] sm:$0xff]   ;;  %v2827_v20 = vld [vmem:[%s3061_s8 + $0xd0] sm:$0xff]  }
  0x45   : > { %v2828_v21 = vld [vmem:[%s3061_s8 + $0x138] sm:$0xff]   ;;  %v2830_v23 = vld [vmem:[%s3061_s8 + $0x140] sm:$0xff]   ;;  %v2832_v25 = vld [vmem:[%s3061_s8 + $0x148] sm:$0xff]  }
  0x46   : > { %2527 = vmatpush3.bf16.msra.mxu0 %v2799_v56  ;;  %2589 = vmatpush3.bf16.msra.mxu1 %v2799_v56  ;;  %v2829_v22 = vld [vmem:[%s3061_s8 + $0xd8] sm:$0xff]   ;;  %v2831_v24 = vld [vmem:[%s3061_s8 + $0xe0] sm:$0xff]   ;;  %v2833_v26 = vld [vmem:[%s3061_s8 + $0xe8] sm:$0xff]  }
  0x47   : > { %2528 = vmatprep.subr.bf16.mxu0 %v2877_v53  ;;  %2590 = vmatprep.subr.bf16.mxu1 %v2877_v53  ;;  %v2834_v27 = vld [vmem:[%s3061_s8 + $0x150] sm:$0xff]   ;;  %v2836_v29 = vld [vmem:[%s3061_s8 + $0x158] sm:$0xff]   ;;  %v2838_v31 = vld [vmem:[%s3061_s8 + $0x160] sm:$0xff]  }
  0x48   : > { %v2835_v28 = vld [vmem:[%s3061_s8 + $0xf0] sm:$0xff]   ;;  %v2837_v30 = vld [vmem:[%s3061_s8 + $0xf8] sm:$0xff]   ;;  %v2839_v32 = vld [vmem:[%s3061_s8 + $0x100] sm:$0xff]  }
  0x49   : > { %v2840_v33 = vld [vmem:[%s3061_s8 + $0x168] sm:$0xff]   ;;  %v2842_v35 = vld [vmem:[%s3061_s8 + $0x170] sm:$0xff]   ;;  %v2844_v37 = vld [vmem:[%s3061_s8 + $0x178] sm:$0xff]  }
  0x4a   : > { %2529 = vmatpush3.bf16.msra.mxu0 %v2800_v57  ;;  %2591 = vmatpush3.bf16.msra.mxu1 %v2800_v57  ;;  %v2841_v34 = vld [vmem:[%s3061_s8 + $0x108] sm:$0xff]   ;;  %v2843_v36 = vld [vmem:[%s3061_s8 + $0x110] sm:$0xff]   ;;  %v2845_v38 = vld [vmem:[%s3061_s8 + $0x118] sm:$0xff]  }
  0x4b   : > { %2644 = vmatprep.subr.bf16.mxu0 %v2877_v53  ;;  %2706 = vmatprep.subr.bf16.mxu1 %v2877_v53  ;;  %v2846_v39 = vld [vmem:[%s3061_s8 + $0x180] sm:$0xff]   ;;  %v2848_v41 = vld [vmem:[%s3061_s8 + $0x188] sm:$0xff]   ;;  %v2850_v43 = vld [vmem:[%s3061_s8 + $0x190] sm:$0xff]  }
  0x4c   : > { %v2847_v40 = vld [vmem:[%s3061_s8 + $0x120] sm:$0xff]   ;;  %v2849_v42 = vld [vmem:[%s3061_s8 + $0x128] sm:$0xff]   ;;  %v2851_v44 = vld [vmem:[%s3061_s8 + $0x130] sm:$0xff]  }
  0x4d   : > { %2531 = vmatmul.mubr.msk.bf16.vlgmr.msra.gmra.mrb[0].mxu0 %vm759_vm1, %v2801_v58  ;;  %2593 = vmatmul.mubr.msk.bf16.vlgmr.msra.gmra.mrb[0].mxu1 %vm759_vm1, %v2802_v59  ;;  %v2852_v45 = vld [vmem:[%s3061_s8 + $0x198] sm:$0xff]  }
  0x4e   : > { %2645 = vmatpush3.bf16.msra.mxu0 %v2796_v52  ;;  %2707 = vmatpush3.bf16.msra.mxu1 %v2796_v52 }
  0x4f   : > { %2534 = vmatprep.mubr.msk.bf16.mxu0 %vm2878_vm0, %v2877_v53  ;;  %2596 = vmatprep.mubr.msk.bf16.mxu1 %vm2878_vm0, %v2877_v53 }
  0x50   : > { %2646 = vmatprep.subr.bf16.mxu0 %v2877_v53  ;;  %2708 = vmatprep.subr.bf16.mxu1 %v2877_v53 }
  0x52   : > { %2647 = vmatpush3.bf16.msra.mxu0 %v2797_v54  ;;  %2709 = vmatpush3.bf16.msra.mxu1 %v2797_v54 }
  0x53   : > { %2648 = vmatprep.subr.bf16.mxu0 %v2877_v53  ;;  %2710 = vmatprep.subr.bf16.mxu1 %v2877_v53 }
  0x55   : > { %2535 = vmatmul.mubr.msk.bf16.gmra.mrb[4].mxu0 %vm759_vm1, %v2803_v60  ;;  %2597 = vmatmul.mubr.msk.bf16.gmra.mrb[4].mxu1 %vm759_vm1, %v2804_v61 }
  0x56   : > { %2538 = vmatprep.mubr.msk.bf16.mxu0 %vm2878_vm0, %v2877_v53  ;;  %2600 = vmatprep.mubr.msk.bf16.mxu1 %vm2878_vm0, %v2877_v53 }
  0x57   : > { %2649 = vmatpush3.bf16.msra.mxu0 %v2798_v55  ;;  %2711 = vmatpush3.bf16.msra.mxu1 %v2798_v55 }
  0x58   : > { %2650 = vmatprep.subr.bf16.mxu0 %v2877_v53  ;;  %2712 = vmatprep.subr.bf16.mxu1 %v2877_v53 }
  0x5b   : > { %2651 = vmatpush3.bf16.msra.mxu0 %v2799_v56  ;;  %2713 = vmatpush3.bf16.msra.mxu1 %v2799_v56 }
  0x5c   : > { %2652 = vmatprep.subr.bf16.mxu0 %v2877_v53  ;;  %2714 = vmatprep.subr.bf16.mxu1 %v2877_v53 }
  0x5d   : > { %2539 = vmatmul.mubr.msk.bf16.gmra.mrb[8].mxu0 %vm759_vm1, %v2805_v62  ;;  %2601 = vmatmul.mubr.msk.bf16.gmra.mrb[8].mxu1 %vm759_vm1, %v2806_v63  ;;  %v3453_v63 = vld [vmem:[%s3586_s2] ss:$0 sm:$0xff] }
  0x5e   : > { %2542 = vmatprep.mubr.msk.bf16.mxu0 %vm2878_vm0, %v2877_v53  ;;  %2604 = vmatprep.mubr.msk.bf16.mxu1 %vm2878_vm0, %v2877_v53 }
  0x5f   : > { %2653 = vmatpush3.bf16.msra.mxu0 %v2800_v57  ;;  %2715 = vmatpush3.bf16.msra.mxu1 %v2800_v57 }
  0x65   : > { %2543 = vmatmul.mubr.msk.bf16.gmra.mrb[12].mxu0 %vm759_vm1, %v2807_v0  ;;  %2605 = vmatmul.mubr.msk.bf16.gmra.mrb[12].mxu1 %vm759_vm1, %v2808_v1 }
  0x66   : > { %2546 = vmatprep.mubr.msk.bf16.mxu0 %vm2878_vm0, %v2877_v53  ;;  %2608 = vmatprep.mubr.msk.bf16.mxu1 %vm2878_vm0, %v2877_v53 }
  0x6d   : > { %2547 = vmatmul.mubr.msk.bf16.gmra.mrb[16].mxu0 %vm759_vm1, %v2809_v2  ;;  %2609 = vmatmul.mubr.msk.bf16.gmra.mrb[16].mxu1 %vm759_vm1, %v2810_v3 }
  0x6e   : > { %2550 = vmatprep.mubr.msk.bf16.mxu0 %vm2878_vm0, %v2877_v53  ;;  %2612 = vmatprep.mubr.msk.bf16.mxu1 %vm2878_vm0, %v2877_v53 }
  0x75   : > { %2551 = vmatmul.mubr.msk.bf16.gmra.mrb[20].mxu0 %vm759_vm1, %v2811_v4  ;;  %2613 = vmatmul.mubr.msk.bf16.gmra.mrb[20].mxu1 %vm759_vm1, %v2812_v5 }
  0x76   : > { %2554 = vmatprep.mubr.msk.bf16.mxu0 %vm2878_vm0, %v2877_v53  ;;  %2616 = vmatprep.mubr.msk.bf16.mxu1 %vm2878_vm0, %v2877_v53 }
  0x7d   : > { %2555 = vmatmul.mubr.msk.bf16.gmra.mrb[24].mxu0 %vm759_vm1, %v2813_v6  ;;  %2617 = vmatmul.mubr.msk.bf16.gmra.mrb[24].mxu1 %vm759_vm1, %v2814_v7 }
  0x7e   : > { %2558 = vmatprep.mubr.msk.bf16.mxu0 %vm2878_vm0, %v2877_v53  ;;  %2620 = vmatprep.mubr.msk.bf16.mxu1 %vm2878_vm0, %v2877_v53 }
  0x85   : > { %2559 = vmatmul.mubr.msk.bf16.gmra.mrb[28].mxu0 %vm759_vm1, %v2815_v8  ;;  %2621 = vmatmul.mubr.msk.bf16.gmra.mrb[28].mxu1 %vm759_vm1, %v2816_v9 }
  0x86   : > { %2562 = vmatprep.mubr.msk.bf16.mxu0 %vm2878_vm0, %v2877_v53  ;;  %2624 = vmatprep.mubr.msk.bf16.mxu1 %vm2878_vm0, %v2877_v53 }
  0x8d   : > { %2563 = vmatmul.mubr.msk.bf16.gmra.mrb[32].mxu0 %vm759_vm1, %v2817_v10  ;;  %2625 = vmatmul.mubr.msk.bf16.gmra.mrb[32].mxu1 %vm759_vm1, %v2818_v11 }
  0x8e   : > { %2566 = vmatprep.mubr.msk.bf16.mxu0 %vm2878_vm0, %v2877_v53  ;;  %2628 = vmatprep.mubr.msk.bf16.mxu1 %vm2878_vm0, %v2877_v53 }
  0x95   : > { %2567 = vmatmul.mubr.msk.bf16.gmra.mrb[36].mxu0 %vm759_vm1, %v2819_v12  ;;  %2629 = vmatmul.mubr.msk.bf16.gmra.mrb[36].mxu1 %vm759_vm1, %v2820_v13 }
  0x96   : > { %2570 = vmatprep.mubr.msk.bf16.mxu0 %vm2878_vm0, %v2877_v53  ;;  %2632 = vmatprep.mubr.msk.bf16.mxu1 %vm2878_vm0, %v2877_v53 }
  0x9d   : > { %2571 = vmatmul.mubr.msk.bf16.gmra.mrb[40].mxu0 %vm759_vm1, %v2821_v14  ;;  %2633 = vmatmul.mubr.msk.bf16.gmra.mrb[40].mxu1 %vm759_vm1, %v2822_v15 }
  0x9e   : > { %2574 = vmatprep.mubr.msk.bf16.mxu0 %vm2878_vm0, %v2877_v53  ;;  %2636 = vmatprep.mubr.msk.bf16.mxu1 %vm2878_vm0, %v2877_v53 }
  0xa5   : > { %2575 = vmatmul.mubr.msk.bf16.gmra.mrb[44].mxu0 %vm759_vm1, %v2823_v16  ;;  %2637 = vmatmul.mubr.msk.bf16.gmra.mrb[44].mxu1 %vm759_vm1, %v2824_v17 }
  0xa6   : > { %2578 = vmatprep.mubr.msk.bf16.mxu0 %vm2878_vm0, %v2877_v53  ;;  %2640 = vmatprep.mubr.msk.bf16.mxu1 %vm2878_vm0, %v2877_v53 }
  0xad   : > { %2579 = vmatmul.mubr.msk.bf16.gmra.mrb[48].mxu0 %vm759_vm1, %v2825_v18  ;;  %2641 = vmatmul.mubr.msk.bf16.gmra.mrb[48].mxu1 %vm759_vm1, %v2826_v19 }
  0xae   : > { %2654 = vmatprep.mubr.msk.bf16.mxu0 %vm2878_vm0, %v2877_v53  ;;  %2716 = vmatprep.mubr.msk.bf16.mxu1 %vm2878_vm0, %v2877_v53 }
  0xb5   : > { %2655 = vmatmul.mubr.msk.bf16.vlgmr.msra.gmra.mrb[52].mxu0 %vm759_vm1, %v2827_v20  ;;  %2717 = vmatmul.mubr.msk.bf16.vlgmr.msra.gmra.mrb[52].mxu1 %vm759_vm1, %v2828_v21 }
  0xb6   : > { %2658 = vmatprep.mubr.msk.bf16.mxu0 %vm2878_vm0, %v2877_v53  ;;  %2720 = vmatprep.mubr.msk.bf16.mxu1 %vm2878_vm0, %v2877_v53 }
  0xbd   : > { %2659 = vmatmul.mubr.msk.bf16.gmra.mrb[56].mxu0 %vm759_vm1, %v2829_v22  ;;  %2721 = vmatmul.mubr.msk.bf16.gmra.mrb[56].mxu1 %vm759_vm1, %v2830_v23 }
  0xbe   : > { %2662 = vmatprep.mubr.msk.bf16.mxu0 %vm2878_vm0, %v2877_v53  ;;  %2724 = vmatprep.mubr.msk.bf16.mxu1 %vm2878_vm0, %v2877_v53 }
  0xc5   : > { %2663 = vmatmul.mubr.msk.bf16.gmra.mrb[60].mxu0 %vm759_vm1, %v2831_v24  ;;  %2725 = vmatmul.mubr.msk.bf16.gmra.mrb[60].mxu1 %vm759_vm1, %v2832_v25 }
  0xc6   : > { %2666 = vmatprep.mubr.msk.bf16.mxu0 %vm2878_vm0, %v2877_v53  ;;  %2728 = vmatprep.mubr.msk.bf16.mxu1 %vm2878_vm0, %v2877_v53 }
  0xcd   : > { %2667 = vmatmul.mubr.msk.bf16.gmra.mrb[64].mxu0 %vm759_vm1, %v2833_v26  ;;  %2729 = vmatmul.mubr.msk.bf16.gmra.mrb[64].mxu1 %vm759_vm1, %v2834_v27 }
  0xce   : > { %2670 = vmatprep.mubr.msk.bf16.mxu0 %vm2878_vm0, %v2877_v53  ;;  %2732 = vmatprep.mubr.msk.bf16.mxu1 %vm2878_vm0, %v2877_v53 }
  0xd5   : > { %2671 = vmatmul.mubr.msk.bf16.gmra.mrb[68].mxu0 %vm759_vm1, %v2835_v28  ;;  %2733 = vmatmul.mubr.msk.bf16.gmra.mrb[68].mxu1 %vm759_vm1, %v2836_v29 }
  0xd6   : > { %2674 = vmatprep.mubr.msk.bf16.mxu0 %vm2878_vm0, %v2877_v53  ;;  %2736 = vmatprep.mubr.msk.bf16.mxu1 %vm2878_vm0, %v2877_v53 }
  0xdd   : > { %2675 = vmatmul.mubr.msk.bf16.gmra.mrb[72].mxu0 %vm759_vm1, %v2837_v30  ;;  %2737 = vmatmul.mubr.msk.bf16.gmra.mrb[72].mxu1 %vm759_vm1, %v2838_v31 }
  0xde   : > { %2678 = vmatprep.mubr.msk.bf16.mxu0 %vm2878_vm0, %v2877_v53  ;;  %2740 = vmatprep.mubr.msk.bf16.mxu1 %vm2878_vm0, %v2877_v53 }
  0xe5   : > { %2679 = vmatmul.mubr.msk.bf16.gmra.mrb[76].mxu0 %vm759_vm1, %v2839_v32  ;;  %2741 = vmatmul.mubr.msk.bf16.gmra.mrb[76].mxu1 %vm759_vm1, %v2840_v33 }
  0xe6   : > { %2682 = vmatprep.mubr.msk.bf16.mxu0 %vm2878_vm0, %v2877_v53  ;;  %2744 = vmatprep.mubr.msk.bf16.mxu1 %vm2878_vm0, %v2877_v53 }
  0xed   : > { %2683 = vmatmul.mubr.msk.bf16.gmra.mrb[80].mxu0 %vm759_vm1, %v2841_v34  ;;  %2745 = vmatmul.mubr.msk.bf16.gmra.mrb[80].mxu1 %vm759_vm1, %v2842_v35 }
  0xee   : > { %2686 = vmatprep.mubr.msk.bf16.mxu0 %vm2878_vm0, %v2877_v53  ;;  %2748 = vmatprep.mubr.msk.bf16.mxu1 %vm2878_vm0, %v2877_v53 }
  0xf5   : > { %2687 = vmatmul.mubr.msk.bf16.gmra.mrb[84].mxu0 %vm759_vm1, %v2843_v36  ;;  %2749 = vmatmul.mubr.msk.bf16.gmra.mrb[84].mxu1 %vm759_vm1, %v2844_v37 }
  0xf6   : > { %2690 = vmatprep.mubr.msk.bf16.mxu0 %vm2878_vm0, %v2877_v53  ;;  %2752 = vmatprep.mubr.msk.bf16.mxu1 %vm2878_vm0, %v2877_v53 }
  0xfd   : > { %2691 = vmatmul.mubr.msk.bf16.gmra.mrb[88].mxu0 %vm759_vm1, %v2845_v38  ;;  %2753 = vmatmul.mubr.msk.bf16.gmra.mrb[88].mxu1 %vm759_vm1, %v2846_v39 }
  0xfe   : > { %2694 = vmatprep.mubr.msk.bf16.mxu0 %vm2878_vm0, %v2877_v53  ;;  %2756 = vmatprep.mubr.msk.bf16.mxu1 %vm2878_vm0, %v2877_v53 }
 0x105   : > { %2695 = vmatmul.mubr.msk.bf16.gmra.mrb[92].mxu0 %vm759_vm1, %v2847_v40  ;;  %2757 = vmatmul.mubr.msk.bf16.gmra.mrb[92].mxu1 %vm759_vm1, %v2848_v41 }
 0x106   : > { %2698 = vmatprep.mubr.msk.bf16.mxu0 %vm2878_vm0, %v2877_v53  ;;  %2760 = vmatprep.mubr.msk.bf16.mxu1 %vm2878_vm0, %v2877_v53 }
 0x10d   : > { %2699 = vmatmul.mubr.msk.bf16.gmra.mrb[96].mxu0 %vm759_vm1, %v2849_v42  ;;  %2761 = vmatmul.mubr.msk.bf16.gmra.mrb[96].mxu1 %vm759_vm1, %v2850_v43 }
 0x10e   : > { %2702 = vmatprep.mubr.msk.bf16.mxu0 %vm2878_vm0, %v2877_v53  ;;  %2764 = vmatprep.mubr.msk.bf16.mxu1 %vm2878_vm0, %v2877_v53 }
 0x115   : > { %2703 = vmatmul.mubr.msk.bf16.gmra.mrb[100].mxu0 %vm759_vm1, %v2851_v44  ;;  %2765 = vmatmul.mubr.msk.bf16.gmra.mrb[100].mxu1 %vm759_vm1, %v2852_v45 }
 0x120   : > { %v3289_v46 = vpop.f32.mrb[0].mxu0  ;;  %v3291_v47 = vpop.f32.mrb[0].mxu1 }
 0x121   : > { %v1204_v48 = vmax.f32 %v3289_v46, %v3291_v47  ;;  %v2532_v49 = vpop.f32.mrb[1].mxu0  ;;  %v2594_v50 = vpop.f32.mrb[1].mxu1 }
 0x122   : > { %v3295_v51 = vpop.f32.mrb[2].mxu0  ;;  %v3297_v52 = vpop.f32.mrb[2].mxu1 }
 0x123   : > { %v1205_v53 = vmax.f32 %v3295_v51, %v3297_v52  ;;  %v2533_v54 = vpop.f32.mrb[3].mxu0  ;;  %v2595_v55 = vpop.f32.mrb[3].mxu1 }
 0x128   : > { %v3301_v56 = vpop.f32.mrb[4].mxu0  ;;  %v3303_v57 = vpop.f32.mrb[4].mxu1 }
 0x129   : > { %v2536_v59 = vpop.f32.mrb[5].mxu0  ;;  %v2598_v60 = vpop.f32.mrb[5].mxu1 }
 0x12a   : > { %v3307_v61 = vpop.f32.mrb[6].mxu0  ;;  %v3309_v62 = vpop.f32.mrb[6].mxu1 }
 0x12b   : > { %v2537_v0 = vpop.f32.mrb[7].mxu0  ;;  %v2599_v1 = vpop.f32.mrb[7].mxu1 }
 0x130   : > { %v3313_v2 = vpop.f32.mrb[8].mxu0  ;;  %v3315_v3 = vpop.f32.mrb[8].mxu1 }
 0x131   : > { %v2540_v5 = vpop.f32.mrb[9].mxu0  ;;  %v2602_v6 = vpop.f32.mrb[9].mxu1 }
 0x132   : > { %v3319_v7 = vpop.f32.mrb[10].mxu0  ;;  %v3321_v8 = vpop.f32.mrb[10].mxu1 }
 0x133   : > { %v2541_v10 = vpop.f32.mrb[11].mxu0  ;;  %v2603_v11 = vpop.f32.mrb[11].mxu1 }
 0x138   : > { %v3325_v12 = vpop.f32.mrb[12].mxu0  ;;  %v3327_v13 = vpop.f32.mrb[12].mxu1 }
 0x139   : > { %v2544_v15 = vpop.f32.mrb[13].mxu0  ;;  %v2606_v16 = vpop.f32.mrb[13].mxu1 }
 0x13a   : > { %v3331_v17 = vpop.f32.mrb[14].mxu0  ;;  %v3333_v18 = vpop.f32.mrb[14].mxu1 }
 0x13b   : > { %v2545_v20 = vpop.f32.mrb[15].mxu0  ;;  %v2607_v21 = vpop.f32.mrb[15].mxu1 }
 0x140   : > { %v3337_v22 = vpop.f32.mrb[16].mxu0  ;;  %v3339_v23 = vpop.f32.mrb[16].mxu1 }
 0x141   : > { %v2548_v25 = vpop.f32.mrb[17].mxu0  ;;  %v2610_v26 = vpop.f32.mrb[17].mxu1 }
 0x142   : > { %v3343_v27 = vpop.f32.mrb[18].mxu0  ;;  %v3345_v28 = vpop.f32.mrb[18].mxu1 }
 0x143   : > { %v2549_v30 = vpop.f32.mrb[19].mxu0  ;;  %v2611_v31 = vpop.f32.mrb[19].mxu1 }
 0x148   : > { %v3349_v32 = vpop.f32.mrb[20].mxu0  ;;  %v3351_v33 = vpop.f32.mrb[20].mxu1 }
 0x149   : > { %v2552_v35 = vpop.f32.mrb[21].mxu0  ;;  %v2614_v36 = vpop.f32.mrb[21].mxu1 }
 0x14a   : > { %v3355_v37 = vpop.f32.mrb[22].mxu0  ;;  %v3357_v38 = vpop.f32.mrb[22].mxu1 }
 0x14b   : > { %v2553_v40 = vpop.f32.mrb[23].mxu0  ;;  %v2615_v41 = vpop.f32.mrb[23].mxu1 }
 0x150   : > { %v3361_v42 = vpop.f32.mrb[24].mxu0  ;;  %v3363_v43 = vpop.f32.mrb[24].mxu1 }
 0x151   : > { %v2556_v45 = vpop.f32.mrb[25].mxu0  ;;  %v2618_v49 = vpop.f32.mrb[25].mxu1 }
 0x152   : > { %v3367_v50 = vpop.f32.mrb[26].mxu0  ;;  %v3369_v54 = vpop.f32.mrb[26].mxu1 }
 0x153   : > { %v2557_v59 = vpop.f32.mrb[27].mxu0  ;;  %v2619_v60 = vpop.f32.mrb[27].mxu1 }
 0x158   : > { %v3373_v0 = vpop.f32.mrb[28].mxu0  ;;  %v3375_v1 = vpop.f32.mrb[28].mxu1 }
 0x159   : > { %v2560_v6 = vpop.f32.mrb[29].mxu0  ;;  %v2622_v10 = vpop.f32.mrb[29].mxu1 }
 0x15a   : > { %v3379_v11 = vpop.f32.mrb[30].mxu0  ;;  %v3381_v15 = vpop.f32.mrb[30].mxu1 }
 0x15b   : > { %v2561_v20 = vpop.f32.mrb[31].mxu0  ;;  %v2623_v21 = vpop.f32.mrb[31].mxu1 }
 0x160   : > { %v3385_v25 = vpop.f32.mrb[32].mxu0  ;;  %v3387_v26 = vpop.f32.mrb[32].mxu1 }
 0x161   : > { %v2564_v31 = vpop.f32.mrb[33].mxu0  ;;  %v2626_v35 = vpop.f32.mrb[33].mxu1 }
 0x162   : > { %v3391_v36 = vpop.f32.mrb[34].mxu0  ;;  %v3393_v40 = vpop.f32.mrb[34].mxu1 }
 0x163   : > { %v2565_v45 = vpop.f32.mrb[35].mxu0  ;;  %v2627_v49 = vpop.f32.mrb[35].mxu1 }
 0x168   : > { %v3397_v59 = vpop.f32.mrb[36].mxu0  ;;  %v3399_v60 = vpop.f32.mrb[36].mxu1 }
 0x169   : > { %v2568_v10 = vpop.f32.mrb[37].mxu0  ;;  %v2630_v20 = vpop.f32.mrb[37].mxu1 }
 0x16a   : > { %v3403_v21 = vpop.f32.mrb[38].mxu0  ;;  %v3405_v31 = vpop.f32.mrb[38].mxu1 }
 0x16b   : > { %v2569_v30 = vpop.f32.mrb[39].mxu0  ;;  %v2631_v41 = vpop.f32.mrb[39].mxu1 }
 0x170   : > { %v3409_v45 = vpop.f32.mrb[40].mxu0  ;;  %v3411_v49 = vpop.f32.mrb[40].mxu1 }
 0x171   : > { %v2572_v5 = vpop.f32.mrb[41].mxu0  ;;  %v2634_v6 = vpop.f32.mrb[41].mxu1 }
 0x172   : > { %v3415_v10 = vpop.f32.mrb[42].mxu0  ;;  %v3417_v20 = vpop.f32.mrb[42].mxu1 }
 0x173   : > { %v2573_v44 = vpop.f32.mrb[43].mxu0  ;;  %v2635_v35 = vpop.f32.mrb[43].mxu1 }
 0x178   : > { %v3421_v30 = vpop.f32.mrb[44].mxu0  ;;  %v3423_v41 = vpop.f32.mrb[44].mxu1 }
 0x179   : > { %v2576_v34 = vpop.f32.mrb[45].mxu0  ;;  %v2638_v16 = vpop.f32.mrb[45].mxu1 }
 0x17a   : > { %v3427_v5 = vpop.f32.mrb[46].mxu0  ;;  %v3429_v6 = vpop.f32.mrb[46].mxu1 }
 0x17b   : > { %v2577_v55 = vpop.f32.mrb[47].mxu0  ;;  %v2639_v44 = vpop.f32.mrb[47].mxu1 }
 0x180   : > { %v3433_v35 = vpop.f32.mrb[48].mxu0  ;;  %v3435_v24 = vpop.f32.mrb[48].mxu1 }
 0x181   : > { %3591 = vst [vmem:[#allocation3_spill] sm:$0xff] %v3435_v24  ;;  %v2580_v39 = vpop.f32.mrb[49].mxu0  ;;  %v2642_v34 = vpop.f32.mrb[49].mxu1 }
 0x182   : > { %v3439_v16 = vpop.f32.mrb[50].mxu0  ;;  %v3441_v14 = vpop.f32.mrb[50].mxu1 }
 0x183   : > { %3592 = vst [vmem:[#allocation4_spill] sm:$0xff] %v3439_v16  ;;  %3593 = vst [vmem:[#allocation5_spill] sm:$0xff] %v3441_v14  ;;  %v2581_v4 = vpop.f32.mrb[51].mxu0  ;;  %v2643_v29 = vpop.f32.mrb[51].mxu1 }
 0x188   : > { %v1395_v55 = vpop.f32.mrb[52].mxu0  ;;  %v1689_v44 = vpop.f32.mrb[52].mxu1 }
 0x189   : > { %v1498_v19 = vmax.f32 %v1204_v48, %v1395_v55  ;;  %v2656_v39 = vpop.f32.mrb[53].mxu0  ;;  %v2718_v34 = vpop.f32.mrb[53].mxu1 }
 0x18a   : > { %v1398_v58 = vpop.f32.mrb[54].mxu0  ;;  %v1692_v9 = vpop.f32.mrb[54].mxu1 }
 0x18b   : > { %v1792_v4 = vmax.f32 %v1498_v19, %v1689_v44  ;;  %v1499_v29 = vmax.f32 %v1205_v53, %v1398_v58  ;;  %v2657_v14 = vpop.f32.mrb[55].mxu0  ;;  %v2719_v16 = vpop.f32.mrb[55].mxu1  ;;  %v3594_v19 = vmax.f32 %v3301_v56, %v3303_v57 }
 0x18d   : > { %v1825_v46 = vadd.f32 %v3453_v63, %v1792_v4  ;;  %v1793_v47 = vmax.f32 %v1499_v29, %v1692_v9  ;;  %v3595_v4 = vmax.f32 %v3307_v61, %v3309_v62  ;;  %v3596_v61 = vmax.f32 %v3313_v2, %v3315_v3 }
 0x18f   : > { %v1877_v48 = vmul.f32 0.2, %v1825_v46  ;;  %v1826_v55 = vadd.f32 %v3453_v63, %v1793_v47  ;;  %vm1851_vm2 = vcmp.ge.f32.partialorder %v1825_v46, 0.0 }
 0x190   : > { %v1403_v39 = vpop.f32.mrb[56].mxu0  ;;  %v1697_v34 = vpop.f32.mrb[56].mxu1 }
 0x191   : > { %vm1852_vm3 = vcmp.ge.f32.partialorder %v1826_v55, 0.0  ;;  %v1878_v24 = vmul.f32 0.2, %v1826_v55  ;;  %v1500_v51 = vmax.f32 %v3594_v19, %v1403_v39  ;;  %v2660_v52 = vpop.f32.mrb[57].mxu0  ;;  %v2722_v53 = vpop.f32.mrb[57].mxu1  ;;  %v1903_v16 = vsel %vm1851_vm2, %v1825_v46, %v1877_v48 }
 0x192   : > { %v1406_v58 = vpop.f32.mrb[58].mxu0  ;;  %v1700_v14 = vpop.f32.mrb[58].mxu1 }
 0x193   : > { %v1904_v9 = vsel %vm1852_vm3, %v1826_v55, %v1878_v24  ;;  %v1794_v44 = vmax.f32 %v1500_v51, %v1697_v34  ;;  %v1501_v29 = vmax.f32 %v3595_v4, %v1406_v58  ;;  %v2661_v47 = vpop.f32.mrb[59].mxu0  ;;  %v2723_v56 = vpop.f32.mrb[59].mxu1 }
 0x194   : > { %v2374_v57 = vpack.c.bf16 %v1904_v9, %v1903_v16 }
 0x195   : > { %v1827_v39 = vadd.f32 %v3453_v63, %v1794_v44  ;;  %v1795_v19 = vmax.f32 %v1501_v29, %v1700_v14  ;;  %v3597_v44 = vmax.f32 %v3319_v7, %v3321_v8  ;;  %v3598_v7 = vmax.f32 %v3325_v12, %v3327_v13 }
 0x196   : > { %2375 = vst [vmem:[%s3466_s22] sm:$0xff] %v2374_v57  }
 0x197   : > { %v1879_v46 = vmul.f32 0.2, %v1827_v39  ;;  %v1828_v48 = vadd.f32 %v3453_v63, %v1795_v19  ;;  %vm1853_vm4 = vcmp.ge.f32.partialorder %v1827_v39, 0.0 }
 0x198   : > { %v1411_v52 = vpop.f32.mrb[60].mxu0  ;;  %v1705_v53 = vpop.f32.mrb[60].mxu1 }
 0x199   : > { %vm1854_vm5 = vcmp.ge.f32.partialorder %v1828_v48, 0.0  ;;  %v1880_v24 = vmul.f32 0.2, %v1828_v48  ;;  %v1502_v62 = vmax.f32 %v3596_v61, %v1411_v52  ;;  %v2664_v55 = vpop.f32.mrb[61].mxu0  ;;  %v2726_v34 = vpop.f32.mrb[61].mxu1  ;;  %v1905_v16 = vsel %vm1853_vm4, %v1827_v39, %v1879_v46 }
 0x19a   : > { %v1414_v51 = vpop.f32.mrb[62].mxu0  ;;  %v1708_v58 = vpop.f32.mrb[62].mxu1 }
 0x19b   : > { %v1906_v14 = vsel %vm1854_vm5, %v1828_v48, %v1880_v24  ;;  %v1796_v9 = vmax.f32 %v1502_v62, %v1705_v53  ;;  %v1503_v4 = vmax.f32 %v3597_v44, %v1414_v51  ;;  %v2665_v29 = vpop.f32.mrb[63].mxu0  ;;  %v2727_v47 = vpop.f32.mrb[63].mxu1  ;;  %v3599_v51 = vmax.f32 %v3331_v17, %v3333_v18 }
 0x19c   : > { %v2379_v56 = vpack.c.bf16 %v1906_v14, %v1905_v16  ;;  %v3600_v17 = vmax.f32 %v3337_v22, %v3339_v23 }
 0x19d   : > { %v1829_v57 = vadd.f32 %v3453_v63, %v1796_v9  ;;  %v1797_v19 = vmax.f32 %v1503_v4, %v1708_v58 }
 0x19e   : > { %2436 = vst [vmem:[%s3466_s22 + $0x8] sm:$0xff] %v2379_v56  }
 0x19f   : > { %v1881_v2 = vmul.f32 0.2, %v1829_v57  ;;  %v1830_v3 = vadd.f32 %v3453_v63, %v1797_v19  ;;  %vm1855_vm6 = vcmp.ge.f32.partialorder %v1829_v57, 0.0 }
 0x1a0   : > { %v1419_v52 = vpop.f32.mrb[64].mxu0  ;;  %v1713_v61 = vpop.f32.mrb[64].mxu1 }
 0x1a1   : > { %vm1856_vm7 = vcmp.ge.f32.partialorder %v1830_v3, 0.0  ;;  %v1882_v39 = vmul.f32 0.2, %v1830_v3  ;;  %v1504_v8 = vmax.f32 %v3598_v7, %v1419_v52  ;;  %v2668_v46 = vpop.f32.mrb[65].mxu0  ;;  %v2730_v48 = vpop.f32.mrb[65].mxu1  ;;  %v1907_v62 = vsel %vm1855_vm6, %v1829_v57, %v1881_v2 }
 0x1a2   : > { %v1422_v53 = vpop.f32.mrb[66].mxu0  ;;  %v1716_v24 = vpop.f32.mrb[66].mxu1  ;;  %v3601_v7 = vmax.f32 %v3343_v27, %v3345_v28  ;;  %v3602_v27 = vmax.f32 %v3349_v32, %v3351_v33 }
 0x1a3   : > { %v1908_v55 = vsel %vm1856_vm7, %v1830_v3, %v1882_v39  ;;  %v1798_v34 = vmax.f32 %v1504_v8, %v1713_v61  ;;  %v1505_v58 = vmax.f32 %v3599_v51, %v1422_v53  ;;  %v2669_v16 = vpop.f32.mrb[67].mxu0  ;;  %v2731_v14 = vpop.f32.mrb[67].mxu1 }
 0x1a4   : > { %v2384_v9 = vpack.c.bf16 %v1908_v55, %v1907_v62 }
 0x1a5   : > { %v1831_v44 = vadd.f32 %v3453_v63, %v1798_v34  ;;  %v1799_v4 = vmax.f32 %v1505_v58, %v1716_v24 }
 0x1a6   : > { %2437 = vst [vmem:[%s3466_s22 + $0x10] sm:$0xff] %v2384_v9  }
 0x1a7   : > { %v1883_v12 = vmul.f32 0.2, %v1831_v44  ;;  %v1832_v13 = vadd.f32 %v3453_v63, %v1799_v4  ;;  %vm1857_vm8 = vcmp.ge.f32.partialorder %v1831_v44, 0.0 }
 0x1a8   : > { %v1427_v29 = vpop.f32.mrb[68].mxu0  ;;  %v1721_v47 = vpop.f32.mrb[68].mxu1 }
 0x1a9   : > { %vm1858_vm9 = vcmp.ge.f32.partialorder %v1832_v13, 0.0  ;;  %v1884_v56 = vmul.f32 0.2, %v1832_v13  ;;  %v1506_v18 = vmax.f32 %v3600_v17, %v1427_v29  ;;  %v2672_v57 = vpop.f32.mrb[69].mxu0  ;;  %v2734_v19 = vpop.f32.mrb[69].mxu1  ;;  %v1909_v52 = vsel %vm1857_vm8, %v1831_v44, %v1883_v12 }
 0x1aa   : > { %v1430_v2 = vpop.f32.mrb[70].mxu0  ;;  %v1724_v3 = vpop.f32.mrb[70].mxu1 }
 0x1ab   : > { %v1910_v61 = vsel %vm1858_vm9, %v1832_v13, %v1884_v56  ;;  %v1800_v39 = vmax.f32 %v1506_v18, %v1721_v47  ;;  %v1507_v8 = vmax.f32 %v3601_v7, %v1430_v2  ;;  %v2673_v46 = vpop.f32.mrb[71].mxu0  ;;  %v2735_v48 = vpop.f32.mrb[71].mxu1  ;;  %v3603_v13 = vmax.f32 %v3355_v37, %v3357_v38 }
 0x1ac   : > { %v2389_v53 = vpack.c.bf16 %v1910_v61, %v1909_v52  ;;  %v3604_v37 = vmax.f32 %v3361_v42, %v3363_v43 }
 0x1ad   : > { %v1833_v24 = vadd.f32 %v3453_v63, %v1800_v39  ;;  %v1801_v62 = vmax.f32 %v1507_v8, %v1724_v3 }
 0x1ae   : > { %2438 = vst [vmem:[%s3466_s22 + $0x18] sm:$0xff] %v2389_v53   ;;  %v3605_v53 = vmax.f32 %v3367_v50, %v3369_v54  ;;  %v3606_v50 = vmax.f32 %v3373_v0, %v3375_v1 }
 0x1af   : > { %v1885_v22 = vmul.f32 0.2, %v1833_v24  ;;  %v1834_v23 = vadd.f32 %v3453_v63, %v1801_v62  ;;  %vm1859_vm10 = vcmp.ge.f32.partialorder %v1833_v24, 0.0 }
 0x1b0   : > { %v1435_v55 = vpop.f32.mrb[72].mxu0  ;;  %v1729_v34 = vpop.f32.mrb[72].mxu1 }
 0x1b1   : > { %vm1860_vm11 = vcmp.ge.f32.partialorder %v1834_v23, 0.0  ;;  %v1886_v51 = vmul.f32 0.2, %v1834_v23  ;;  %v1508_v28 = vmax.f32 %v3602_v27, %v1435_v55  ;;  %v2676_v58 = vpop.f32.mrb[73].mxu0  ;;  %v2738_v16 = vpop.f32.mrb[73].mxu1  ;;  %v1911_v44 = vsel %vm1859_vm10, %v1833_v24, %v1885_v22 }
 0x1b2   : > { %v1438_v14 = vpop.f32.mrb[74].mxu0  ;;  %v1732_v9 = vpop.f32.mrb[74].mxu1 }
 0x1b3   : > { %v1912_v4 = vsel %vm1860_vm11, %v1834_v23, %v1886_v51  ;;  %v1802_v12 = vmax.f32 %v1508_v28, %v1729_v34  ;;  %v1509_v29 = vmax.f32 %v3603_v13, %v1438_v14  ;;  %v2677_v47 = vpop.f32.mrb[75].mxu0  ;;  %v2739_v56 = vpop.f32.mrb[75].mxu1  ;;  %v3607_v13 = vmax.f32 %v3379_v11, %v3381_v15 }
 0x1b4   : > { %v2394_v17 = vpack.c.bf16 %v1912_v4, %v1911_v44  ;;  %v3608_v11 = vmax.f32 %v3385_v25, %v3387_v26 }
 0x1b5   : > { %v1835_v18 = vadd.f32 %v3453_v63, %v1802_v12  ;;  %v1803_v57 = vmax.f32 %v1509_v29, %v1732_v9 }
 0x1b6   : > { %2439 = vst [vmem:[%s3466_s22 + $0x20] sm:$0xff] %v2394_v17  }
 0x1b7   : > { %v1887_v32 = vmul.f32 0.2, %v1835_v18  ;;  %v1836_v33 = vadd.f32 %v3453_v63, %v1803_v57  ;;  %vm1861_vm12 = vcmp.ge.f32.partialorder %v1835_v18, 0.0 }
 0x1b8   : > { %v1443_v19 = vpop.f32.mrb[76].mxu0  ;;  %v1737_v2 = vpop.f32.mrb[76].mxu1 }
 0x1b9   : > { %vm1862_vm13 = vcmp.ge.f32.partialorder %v1836_v33, 0.0  ;;  %v1888_v3 = vmul.f32 0.2, %v1836_v33  ;;  %v1510_v38 = vmax.f32 %v3604_v37, %v1443_v19  ;;  %v2680_v52 = vpop.f32.mrb[77].mxu0  ;;  %v2742_v61 = vpop.f32.mrb[77].mxu1  ;;  %v1913_v8 = vsel %vm1861_vm12, %v1835_v18, %v1887_v32 }
 0x1ba   : > { %v1446_v39 = vpop.f32.mrb[78].mxu0  ;;  %v1740_v7 = vpop.f32.mrb[78].mxu1 }
 0x1bb   : > { %v1914_v46 = vsel %vm1862_vm13, %v1836_v33, %v1888_v3  ;;  %v1804_v48 = vmax.f32 %v1510_v38, %v1737_v2  ;;  %v1511_v24 = vmax.f32 %v3605_v53, %v1446_v39  ;;  %v2681_v62 = vpop.f32.mrb[79].mxu0  ;;  %v2743_v22 = vpop.f32.mrb[79].mxu1 }
 0x1bc   : > { %v2399_v23 = vpack.c.bf16 %v1914_v46, %v1913_v8 }
 0x1bd   : > { %v1837_v55 = vadd.f32 %v3453_v63, %v1804_v48  ;;  %v1805_v34 = vmax.f32 %v1511_v24, %v1740_v7  ;;  %v3609_v7 = vmax.f32 %v3391_v36, %v3393_v40  ;;  %v3610_v36 = vmax.f32 %v3397_v59, %v3399_v60 }
 0x1be   : > { %2440 = vst [vmem:[%s3466_s22 + $0x28] sm:$0xff] %v2399_v23  }
 0x1bf   : > { %v1889_v42 = vmul.f32 0.2, %v1837_v55  ;;  %v1838_v43 = vadd.f32 %v3453_v63, %v1805_v34  ;;  %vm1863_vm14 = vcmp.ge.f32.partialorder %v1837_v55, 0.0 }
 0x1c0   : > { %v1451_v51 = vpop.f32.mrb[80].mxu0  ;;  %v1745_v27 = vpop.f32.mrb[80].mxu1 }
 0x1c1   : > { %vm1864_vm15 = vcmp.ge.f32.partialorder %v1838_v43, 0.0  ;;  %v1890_v28 = vmul.f32 0.2, %v1838_v43  ;;  %v1512_v54 = vmax.f32 %v3606_v50, %v1451_v51  ;;  %v2684_v58 = vpop.f32.mrb[81].mxu0  ;;  %v2746_v16 = vpop.f32.mrb[81].mxu1  ;;  %v1915_v44 = vsel %vm1863_vm14, %v1837_v55, %v1889_v42 }
 0x1c2   : > { %v1454_v14 = vpop.f32.mrb[82].mxu0  ;;  %v1748_v9 = vpop.f32.mrb[82].mxu1 }
 0x1c3   : > { %v1916_v4 = vsel %vm1864_vm15, %v1838_v43, %v1890_v28  ;;  %v1806_v12 = vmax.f32 %v1512_v54, %v1745_v27  ;;  %v1513_v29 = vmax.f32 %v3607_v13, %v1454_v14  ;;  %v2685_v47 = vpop.f32.mrb[83].mxu0  ;;  %v2747_v56 = vpop.f32.mrb[83].mxu1  ;;  %v3611_v54 = vmax.f32 %v3403_v21, %v3405_v31 }
 0x1c4   : > { %v2404_v17 = vpack.c.bf16 %v1916_v4, %v1915_v44  ;;  %v3612_v21 = vmax.f32 %v3409_v45, %v3411_v49 }
 0x1c5   : > { %v1839_v18 = vadd.f32 %v3453_v63, %v1806_v12  ;;  %v1807_v57 = vmax.f32 %v1513_v29, %v1748_v9 }
 0x1c6   : > { %2441 = vst [vmem:[%s3466_s22 + $0x30] sm:$0xff] %v2404_v17  }
 0x1c7   : > { %v1891_v0 = vmul.f32 0.2, %v1839_v18  ;;  %v1840_v1 = vadd.f32 %v3453_v63, %v1807_v57  ;;  %vm1865_vm0 = vcmp.ge.f32.partialorder %v1839_v18, 0.0 }
 0x1c8   : > { %v1459_v32 = vpop.f32.mrb[84].mxu0  ;;  %v1753_v33 = vpop.f32.mrb[84].mxu1 }
 0x1c9   : > { %vm1866_vm1 = vcmp.ge.f32.partialorder %v1840_v1, 0.0  ;;  %v1892_v19 = vmul.f32 0.2, %v1840_v1  ;;  %v1514_v15 = vmax.f32 %v3608_v11, %v1459_v32  ;;  %v2688_v2 = vpop.f32.mrb[85].mxu0  ;;  %v2750_v3 = vpop.f32.mrb[85].mxu1  ;;  %v1917_v52 = vsel %vm1865_vm0, %v1839_v18, %v1891_v0 }
 0x1ca   : > { %v1462_v37 = vpop.f32.mrb[86].mxu0  ;;  %v1756_v38 = vpop.f32.mrb[86].mxu1  ;;  %v3613_v32 = vmax.f32 %v3415_v10, %v3417_v20  ;;  %v3614_v10 = vmax.f32 %v3421_v30, %v3423_v41 }
 0x1cb   : > { %v1918_v61 = vsel %vm1866_vm1, %v1840_v1, %v1892_v19  ;;  %v1808_v39 = vmax.f32 %v1514_v15, %v1753_v33  ;;  %v1515_v8 = vmax.f32 %v3609_v7, %v1462_v37  ;;  %v2689_v46 = vpop.f32.mrb[87].mxu0  ;;  %v2751_v48 = vpop.f32.mrb[87].mxu1 }
 0x1cc   : > { %v2409_v53 = vpack.c.bf16 %v1918_v61, %v1917_v52 }
 0x1cd   : > { %v1841_v24 = vadd.f32 %v3453_v63, %v1808_v39  ;;  %v1809_v62 = vmax.f32 %v1515_v8, %v1756_v38 }
 0x1ce   : > { %2442 = vst [vmem:[%s3466_s22 + $0x38] sm:$0xff] %v2409_v53  }
 0x1cf   : > { %v1893_v25 = vmul.f32 0.2, %v1841_v24  ;;  %v1842_v26 = vadd.f32 %v3453_v63, %v1809_v62  ;;  %vm1867_vm2 = vcmp.ge.f32.partialorder %v1841_v24, 0.0 }
 0x1d0   : > { %v1467_v22 = vpop.f32.mrb[88].mxu0  ;;  %v1761_v23 = vpop.f32.mrb[88].mxu1 }
 0x1d1   : > { %vm1868_vm3 = vcmp.ge.f32.partialorder %v1842_v26, 0.0  ;;  %v1894_v55 = vmul.f32 0.2, %v1842_v26  ;;  %v1516_v40 = vmax.f32 %v3610_v36, %v1467_v22  ;;  %v2692_v34 = vpop.f32.mrb[89].mxu0  ;;  %v2754_v42 = vpop.f32.mrb[89].mxu1  ;;  %v1919_v27 = vsel %vm1867_vm2, %v1841_v24, %v1893_v25 }
 0x1d2   : > { %v1470_v43 = vpop.f32.mrb[90].mxu0  ;;  %v1764_v51 = vpop.f32.mrb[90].mxu1  ;;  %v3615_v24 = vmax.f32 %v3427_v5, %v3429_v6  ;;  %v3616_v42 = vld [vmem:[#allocation3_spill] sm:$0xff] }
 0x1d3   : > { %v1920_v28 = vsel %vm1868_vm3, %v1842_v26, %v1894_v55  ;;  %v1810_v50 = vmax.f32 %v1516_v40, %v1761_v23  ;;  %v1517_v58 = vmax.f32 %v3611_v54, %v1470_v43  ;;  %v2693_v16 = vpop.f32.mrb[91].mxu0  ;;  %v2755_v14 = vpop.f32.mrb[91].mxu1  ;;  %v3617_v5 = vmax.f32 %v3433_v35, %v3616_v42 }
 0x1d4   : > { %v2414_v9 = vpack.c.bf16 %v1920_v28, %v1919_v27  ;;  %v3618_v16 = vld [vmem:[#allocation4_spill] sm:$0xff]  ;;  %v3619_v14 = vld [vmem:[#allocation5_spill] sm:$0xff] }
 0x1d5   : > { %v1843_v44 = vadd.f32 %v3453_v63, %v1810_v50  ;;  %v1811_v4 = vmax.f32 %v1517_v58, %v1764_v51 }
 0x1d6   : > { %2443 = vst [vmem:[%s3466_s22 + $0x40] sm:$0xff] %v2414_v9   ;;  %v3620_v9 = vmax.f32 %v3618_v16, %v3619_v14 }
 0x1d7   : > { %v1895_v59 = vmul.f32 0.2, %v1843_v44  ;;  %v1844_v60 = vadd.f32 %v3453_v63, %v1811_v4  ;;  %vm1869_vm4 = vcmp.ge.f32.partialorder %v1843_v44, 0.0 }
 0x1d8   : > { %v1475_v12 = vpop.f32.mrb[92].mxu0  ;;  %v1769_v13 = vpop.f32.mrb[92].mxu1 }
 0x1d9   : > { %vm1870_vm5 = vcmp.ge.f32.partialorder %v1844_v60, 0.0  ;;  %v1896_v29 = vmul.f32 0.2, %v1844_v60  ;;  %v1518_v31 = vmax.f32 %v3612_v21, %v1475_v12  ;;  %v2696_v47 = vpop.f32.mrb[93].mxu0  ;;  %v2758_v56 = vpop.f32.mrb[93].mxu1  ;;  %v1921_v57 = vsel %vm1869_vm4, %v1843_v44, %v1895_v59 }
 0x1da   : > { %v1478_v17 = vpop.f32.mrb[94].mxu0  ;;  %v1772_v18 = vpop.f32.mrb[94].mxu1 }
 0x1db   : > { %v1922_v0 = vsel %vm1870_vm5, %v1844_v60, %v1896_v29  ;;  %v1812_v1 = vmax.f32 %v1518_v31, %v1769_v13  ;;  %v1519_v33 = vmax.f32 %v3613_v32, %v1478_v17  ;;  %v2697_v19 = vpop.f32.mrb[95].mxu0  ;;  %v2759_v11 = vpop.f32.mrb[95].mxu1 }
 0x1dc   : > { %v2419_v15 = vpack.c.bf16 %v1922_v0, %v1921_v57 }
 0x1dd   : > { %v1845_v2 = vadd.f32 %v3453_v63, %v1812_v1  ;;  %v1813_v3 = vmax.f32 %v1519_v33, %v1772_v18 }
 0x1de   : > { %2444 = vst [vmem:[%s3466_s22 + $0x48] sm:$0xff] %v2419_v15  }
 0x1df   : > { %v1897_v45 = vmul.f32 0.2, %v1845_v2  ;;  %v1846_v49 = vadd.f32 %v3453_v63, %v1813_v3  ;;  %vm1871_vm6 = vcmp.ge.f32.partialorder %v1845_v2, 0.0 }
 0x1e0   : > { %v1483_v37 = vpop.f32.mrb[96].mxu0  ;;  %v1777_v38 = vpop.f32.mrb[96].mxu1 }
 0x1e1   : > { %vm1872_vm7 = vcmp.ge.f32.partialorder %v1846_v49, 0.0  ;;  %v1898_v52 = vmul.f32 0.2, %v1846_v49  ;;  %v1520_v20 = vmax.f32 %v3614_v10, %v1483_v37  ;;  %v2700_v61 = vpop.f32.mrb[97].mxu0  ;;  %v2762_v39 = vpop.f32.mrb[97].mxu1  ;;  %v1923_v46 = vsel %vm1871_vm6, %v1845_v2, %v1897_v45 }
 0x1e2   : > { %v1486_v7 = vpop.f32.mrb[98].mxu0  ;;  %v1780_v8 = vpop.f32.mrb[98].mxu1 }
 0x1e3   : > { %v1924_v48 = vsel %vm1872_vm7, %v1846_v49, %v1898_v52  ;;  %v1814_v53 = vmax.f32 %v1520_v20, %v1777_v38  ;;  %v1521_v62 = vmax.f32 %v3615_v24, %v1486_v7  ;;  %v2701_v25 = vpop.f32.mrb[99].mxu0  ;;  %v2763_v26 = vpop.f32.mrb[99].mxu1 }
 0x1e4   : > { %v2424_v22 = vpack.c.bf16 %v1924_v48, %v1923_v46 }
 0x1e5   : > { %v1847_v23 = vadd.f32 %v3453_v63, %v1814_v53  ;;  %v1815_v55 = vmax.f32 %v1521_v62, %v1780_v8 }
 0x1e6   : > { %2445 = vst [vmem:[%s3466_s22 + $0x50] sm:$0xff] %v2424_v22  }
 0x1e7   : > { %v1899_v30 = vmul.f32 0.2, %v1847_v23  ;;  %v1848_v41 = vadd.f32 %v3453_v63, %v1815_v55  ;;  %vm1873_vm8 = vcmp.ge.f32.partialorder %v1847_v23, 0.0 }
 0x1e8   : > { %v1491_v36 = vpop.f32.mrb[100].mxu0  ;;  %v1785_v40 = vpop.f32.mrb[100].mxu1 }
 0x1e9   : > { %vm1874_vm9 = vcmp.ge.f32.partialorder %v1848_v41, 0.0  ;;  %v1900_v34 = vmul.f32 0.2, %v1848_v41  ;;  %v1522_v6 = vmax.f32 %v3617_v5, %v1491_v36  ;;  %v2704_v43 = vpop.f32.mrb[101].mxu0  ;;  %v2766_v51 = vpop.f32.mrb[101].mxu1  ;;  %v1925_v50 = vsel %vm1873_vm8, %v1847_v23, %v1899_v30 }
 0x1ea   : > { %v1494_v27 = vpop.f32.mrb[102].mxu0  ;;  %v1788_v28 = vpop.f32.mrb[102].mxu1 }
 0x1eb   : > { %v1926_v54 = vsel %vm1874_vm9, %v1848_v41, %v1900_v34  ;;  %v1816_v58 = vmax.f32 %v1522_v6, %v1785_v40  ;;  %v1523_v44 = vmax.f32 %v3620_v9, %v1494_v27  ;;  %v2705_v4 = vpop.f32.mrb[103].mxu0  ;;  %v2767_v59 = vpop.f32.mrb[103].mxu1 }
 0x1ec   : > { %v2429_v60 = vpack.c.bf16 %v1926_v54, %v1925_v50 }
 0x1ed   : > { %v1849_v12 = vadd.f32 %v3453_v63, %v1816_v58  ;;  %v1817_v13 = vmax.f32 %v1523_v44, %v1788_v28 }
 0x1ee   : > { %2446 = vst [vmem:[%s3466_s22 + $0x58] sm:$0xff] %v2429_v60  }
 0x1ef   : > { %v1901_v35 = vmul.f32 0.2, %v1849_v12  ;;  %v1850_v29 = vadd.f32 %v3453_v63, %v1817_v13  ;;  %vm1875_vm10 = vcmp.ge.f32.partialorder %v1849_v12, 0.0 }
 0x1f1   : > { %vm1876_vm11 = vcmp.ge.f32.partialorder %v1850_v29, 0.0  ;;  %v1902_v21 = vmul.f32 0.2, %v1850_v29  ;;  %v1927_v31 = vsel %vm1875_vm10, %v1849_v12, %v1901_v35 }
 0x1f3   : > { %v1928_v47 = vsel %vm1876_vm11, %v1850_v29, %v1902_v21 }
 0x1f4   : > { %v2434_v56 = vpack.c.bf16 %v1928_v47, %v1927_v31 }
 0x1f6   : > { %2447 = vst [vmem:[%s3466_s22 + $0x60] sm:$0xff] %v2434_v56  }
 0x1f7 PF: > { %p10_p9 = scmp.ge.s32.totalorder %s2916_s16, 4   ;;  %s3621_s12 = smov %s2871_s13 }
 0x1f8   : > { %s3622_s13 = smov %s2925_s19  ;;  %s3623_s14 = smov %s2916_s16 }
 0x1f9   :  { %12 = sbr.rel (!%p10_p9) target bundleno = 2 (0x2), region = 111 }

// kernel: net_forward.4
= control target key start
LH: loop header
LB: loop body
LE: loop exit
PB: predicated region body
PF: predicated region fallthrough
CT: control target
= control target key end

     0   :  { %s965_s12 = smov 0   ;;  %s967_s13 = smov 0   ;;  %s1170_s0 = inlined_call_operand.vmem [shape: bf16[4,64,160], index: 0, kind: input, shape index: {}]   ;;  %s1171_s1 = inlined_call_operand.vmem [shape: bf16[160,128], index: 1, kind: input, shape index: {}]   ;;  %s1172_s2 = inlined_call_operand.vmem [shape: f32[1,128], index: 2, kind: input, shape index: {}]   ;;  %s1173_s3 = inlined_call_operand.vmem [shape: bf16[64,128], index: 3, kind: output, shape index: {}]  }
   0x1   :  { %s969_s14 = smov 0  }
   0x2 LB: > { %s779_s15 = sadd.s32 4294967295, %s942_s14   ;;  %s982_s16 = sadd.s32 1, %s942_s14   ;;  %s942_s14 = sphi %s969_s14, %s1176_s14   ;;  %s938_s13 = sphi %s967_s13, %s1175_s13   ;;  %s934_s12 = sphi %s965_s12, %s1174_s12  }
   0x3   : > { %s17_s17 = ssub.s32 %s942_s14, %s982_s16  ;;  %s20_s18 = sadd.s32 1, %s938_s13 }
   0x4   : > { %p18_p0 = scmp.eq.s32.totalorder %s17_s17, 0  ;;  %p27_p1 = scmp.ne.s32.totalorder %s938_s13, %s934_s12 }
   0x5   : > { %p28_p2 = scmp.eq.s32.totalorder %s942_s14, 0  ;;  %p782_p4 = scmp.ge.s32.totalorder %s942_s14, 2 }
   0x6   : > { %s991_s19 = scalar_select %p18_p0, %s938_s13, %s20_s18  }
   0x7   : > { %p29_p3 = por %p28_p2, %p27_p1  ;;  %127 = sbr.rel (%p782_p4) target bundleno = 26 (0x1a), region = 24 }
   0xe   : > { %130 = sbr.rel (!%p29_p3) target bundleno = 26 (0x1a), region = 28  ;;  %s132_s20 = sand.u32 (%p29_p3), 1, %s938_s13  }
   0xf   : > { %s845_s21 = sshll.u32 (%p29_p3), %s942_s14, 5  ;;  %s783_s22 = sshll.u32 (%p29_p3), %s132_s20, 7 }
  0x10   : > { %s999_s25 = scalar_lea.vmem (%p29_p3), %s1170_s0, %s845_s21  ;;  %s134_s26 = scalar_lea.vmem (%p29_p3), [#allocation2], %s783_s22 }
  0x11   : > { %v196_v0 = vld [vmem:[%s999_s25] sm:$0xff] (%p29_p3)  ;;  %v198_v1 = vld [vmem:[%s999_s25 + $0x8] sm:$0xff] (%p29_p3)  ;;  %v200_v2 = vld [vmem:[%s999_s25 + $0x10] sm:$0xff] (%p29_p3) }
  0x12   : > { %197 = vst [vmem:[%s134_s26] sm:$0xff] (%p29_p3), %v196_v0  ;;  %199 = vst [vmem:[%s134_s26 + $0x8] sm:$0xff] (%p29_p3), %v198_v1  ;;  %v202_v3 = vld [vmem:[%s999_s25 + $0x18] sm:$0xff] (%p29_p3)  ;;  %v204_v4 = vld [vmem:[%s999_s25 + $0x40] sm:$0xff] (%p29_p3) }
  0x13   : > { %201 = vst [vmem:[%s134_s26 + $0x10] sm:$0xff] (%p29_p3), %v200_v2  ;;  %v206_v5 = vld [vmem:[%s999_s25 + $0x48] sm:$0xff] (%p29_p3)  ;;  %203 = vst [vmem:[%s134_s26 + $0x18] sm:$0xff] (%p29_p3), %v202_v3  ;;  %v208_v6 = vld [vmem:[%s999_s25 + $0x50] sm:$0xff] (%p29_p3) }
  0x14   : > { %205 = vst [vmem:[%s134_s26 + $0x20] sm:$0xff] (%p29_p3), %v204_v4  ;;  %207 = vst [vmem:[%s134_s26 + $0x28] sm:$0xff] (%p29_p3), %v206_v5  ;;  %v210_v7 = vld [vmem:[%s999_s25 + $0x58] sm:$0xff] (%p29_p3)  ;;  %v212_v8 = vld [vmem:[%s999_s25 + $0x80] sm:$0xff] (%p29_p3) }
  0x15   : > { %209 = vst [vmem:[%s134_s26 + $0x30] sm:$0xff] %v208_v6  ;;  %211 = vst [vmem:[%s134_s26 + $0x38] sm:$0xff] %v210_v7  ;;  %v214_v9 = vld [vmem:[%s999_s25 + $0x88] sm:$0xff]  ;;  %v216_v10 = vld [vmem:[%s999_s25 + $0x90] sm:$0xff] }
  0x16   : > { %213 = vst [vmem:[%s134_s26 + $0x40] sm:$0xff] %v212_v8  ;;  %v218_v11 = vld [vmem:[%s999_s25 + $0x98] sm:$0xff]  ;;  %215 = vst [vmem:[%s134_s26 + $0x48] sm:$0xff] %v214_v9  ;;  %v220_v12 = vld [vmem:[%s999_s25 + $0xc0] sm:$0xff] }
  0x17   : > { %217 = vst [vmem:[%s134_s26 + $0x50] sm:$0xff] %v216_v10  ;;  %219 = vst [vmem:[%s134_s26 + $0x58] sm:$0xff] %v218_v11  ;;  %v222_v13 = vld [vmem:[%s999_s25 + $0xc8] sm:$0xff]  ;;  %v224_v14 = vld [vmem:[%s999_s25 + $0xd0] sm:$0xff] }
  0x18   : > { %221 = vst [vmem:[%s134_s26 + $0x60] sm:$0xff] %v220_v12  ;;  %223 = vst [vmem:[%s134_s26 + $0x68] sm:$0xff] %v222_v13  ;;  %v226_v15 = vld [vmem:[%s999_s25 + $0xd8] sm:$0xff] }
  0x19   : > { %225 = vst [vmem:[%s134_s26 + $0x70] sm:$0xff] %v224_v14  ;;  %227 = vst [vmem:[%s134_s26 + $0x78] sm:$0xff] %v226_v15 }
  0x1a PF: > { %p787_p5 = scmp.ge.s32.totalorder %s942_s14, 1  ;;  %p232_p6 = scmp.lt.s32.totalorder %s942_s14, 3 }
  0x1c   : > { %p233_p7 = pnand %p787_p5, %p232_p6 }
  0x1d   : > { %v1022_v16 = vld [vmem:[%s1171_s1] sm:$0xff] (!%p233_p7)   ;;  %v944_v17 = vmov (!%p233_p7), 0   ;;  %v1031_v18 = vld [vmem:[%s1171_s1 + $0x8] sm:$0xff] (!%p233_p7)   ;;  %s239_s4 = sand.u32 (!%p233_p7), 1, %s934_s12   ;;  %v1041_v19 = vld [vmem:[%s1171_s1 + $0x10] sm:$0xff] (!%p233_p7)   ;;  %vm372_vm0 = vcmask (!%p233_p7), 261120  }
  0x1e   : > { %236 = sbr.rel (%p233_p7) target bundleno = 344 (0x158), region = 66  ;;  %379 = vmatprep.subr.bf16.mxu0 (!%p233_p7), %v944_v17  ;;  %457 = vmatprep.subr.bf16.mxu1 (!%p233_p7), %v944_v17  ;;  %s788_s5 = sshll.u32 (!%p233_p7), %s239_s4, 7  ;;  %v1050_v20 = vld [vmem:[%s1171_s1 + $0x18] sm:$0xff] (!%p233_p7)   ;;  %v1064_v23 = vld [vmem:[%s1171_s1 + $0x20] sm:$0xff] (!%p233_p7)   ;;  %v1074_v24 = vld [vmem:[%s1171_s1 + $0x28] sm:$0xff] (!%p233_p7)  }
  0x1f   : > { %380 = vmatpush1.bf16.msra.mxu0 (!%p233_p7), %v1022_v16  ;;  %458 = vmatpush1.bf16.msra.mxu1 (!%p233_p7), %v1022_v16  ;;  %s1052_s10 = scalar_lea.vmem (!%p233_p7), [#allocation2], %s788_s5  ;;  %v892_v25 = vld [vmem:[%s1171_s1 + $0x30] sm:$0xff] (!%p233_p7)   ;;  %v893_v26 = vld [vmem:[%s1171_s1 + $0x38] sm:$0xff] (!%p233_p7)   ;;  %v894_v27 = vld [vmem:[%s1171_s1 + $0x40] sm:$0xff] (!%p233_p7)   ;;  %s789_s28 = sshll.u32 (!%p233_p7), %s779_s15, 2 }
  0x20   : > { %381 = vmatprep.subr.bf16.mxu0 (!%p233_p7), %v944_v17  ;;  %459 = vmatprep.subr.bf16.mxu1 (!%p233_p7), %v944_v17  ;;  %v898_v21 = vld [vmem:[%s1052_s10 + $0x4] ss:$8 sps:$4 sm:$0xff] (!%p233_p7)   ;;  %v896_v29 = vld [vmem:[%s1052_s10] ss:$8 sps:$4 sm:$0xff] (!%p233_p7)   ;;  %v902_v31 = vld [vmem:[%s1052_s10 + $0x14] ss:$8 sps:$4 sm:$0xff] (!%p233_p7)  }
  0x21   : > { %v901_v22 = vld [vmem:[%s1052_s10 + $0x24] ss:$8 sps:$4 sm:$0xff] (!%p233_p7)   ;;  %805 = vmatprep.mubr.msk.bf16.mxu0 (!%p233_p7), %vm372_vm0, %v898_v21  ;;  %v899_v30 = vld [vmem:[%s1052_s10 + $0x20] ss:$8 sps:$4 sm:$0xff] (!%p233_p7)   ;;  %v905_v32 = vld [vmem:[%s1052_s10 + $0x34] ss:$8 sps:$4 sm:$0xff] (!%p233_p7)  }
  0x22   : > { %815 = vmatprep.mubr.msk.bf16.mxu1 (!%p233_p7), %vm372_vm0, %v901_v22  ;;  %v895_v28 = vld [vmem:[%s1171_s1 + $0x48] sm:$0xff] (!%p233_p7)   ;;  %v904_v33 = vld [vmem:[%s1052_s10 + $0x10] ss:$8 sps:$4 sm:$0xff] (!%p233_p7)   ;;  %v914_v39 = vld [vmem:[%s1052_s10 + $0x54] ss:$8 sps:$4 sm:$0xff] (!%p233_p7)   ;;  %p264_p8 = scmp.lt.s32.totalorder (!%p233_p7), %s789_s28, 7 }
  0x23   : > { %382 = vmatpush1.bf16.msra.mxu0 (!%p233_p7), %v1031_v18  ;;  %460 = vmatpush1.bf16.msra.mxu1 (!%p233_p7), %v1031_v18  ;;  %v907_v34 = vld [vmem:[%s1052_s10 + $0x30] ss:$8 sps:$4 sm:$0xff] (!%p233_p7)   ;;  %v910_v35 = vld [vmem:[%s1052_s10 + $0x44] ss:$8 sps:$4 sm:$0xff] (!%p233_p7)   ;;  %v908_v37 = vld [vmem:[%s1052_s10 + $0x40] ss:$8 sps:$4 sm:$0xff] (!%p233_p7)  }
  0x24   : > { %383 = vmatprep.subr.bf16.mxu0 (!%p233_p7), %v944_v17  ;;  %461 = vmatprep.subr.bf16.mxu1 (!%p233_p7), %v944_v17  ;;  %v913_v36 = vld [vmem:[%s1052_s10 + $0x64] ss:$8 sps:$4 sm:$0xff] (!%p233_p7)   ;;  %v911_v38 = vld [vmem:[%s1052_s10 + $0x60] ss:$8 sps:$4 sm:$0xff] (!%p233_p7)   ;;  %v916_v40 = vld [vmem:[%s1052_s10 + $0x74] ss:$8 sps:$4 sm:$0xff] (!%p233_p7)  }
  0x25   : > { %v918_v41 = vld [vmem:[%s1052_s10 + $0x50] ss:$8 sps:$4 sm:$0xff]   ;;  %v837_v4 = vld [vmem:[%s1172_s2] ss:$0 sm:$0xff]  ;;  %s1178_s28 = smov (!%p264_p8, %s789_s28), 7 }
  0x26   : > { %v919_v42 = vld [vmem:[%s1052_s10 + $0x70] ss:$8 sps:$4 sm:$0xff]   ;;  %s790_s14 = sshll.u32 %s1178_s28, 2 }
  0x27   : > { %384 = vmatpush1.bf16.msra.mxu0 %v1041_v19  ;;  %462 = vmatpush1.bf16.msra.mxu1 %v1041_v19  ;;  %s267_s5 = scalar_lea.vmem %s1173_s3, %s790_s14 }
  0x28   : > { %385 = vmatprep.subr.bf16.mxu0 %v944_v17  ;;  %463 = vmatprep.subr.bf16.mxu1 %v944_v17 }
  0x2b   : > { %386 = vmatpush1.bf16.msra.mxu0 %v1050_v20  ;;  %464 = vmatpush1.bf16.msra.mxu1 %v1050_v20 }
  0x2c   : > { %387 = vmatprep.subr.bf16.mxu0 %v944_v17  ;;  %465 = vmatprep.subr.bf16.mxu1 %v944_v17 }
  0x2f   : > { %388 = vmatpush1.bf16.msra.mxu0 %v1064_v23  ;;  %466 = vmatpush1.bf16.msra.mxu1 %v1064_v23 }
  0x30   : > { %389 = vmatprep.subr.bf16.mxu0 %v944_v17  ;;  %467 = vmatprep.subr.bf16.mxu1 %v944_v17 }
  0x33   : > { %390 = vmatpush1.bf16.msra.mxu0 %v1074_v24  ;;  %468 = vmatpush1.bf16.msra.mxu1 %v1074_v24 }
  0x34   : > { %391 = vmatprep.subr.bf16.mxu0 %v944_v17  ;;  %469 = vmatprep.subr.bf16.mxu1 %v944_v17 }
  0x37   : > { %392 = vmatpush1.bf16.msra.mxu0 %v892_v25  ;;  %470 = vmatpush1.bf16.msra.mxu1 %v892_v25 }
  0x38   : > { %393 = vmatprep.subr.bf16.mxu0 %v944_v17  ;;  %471 = vmatprep.subr.bf16.mxu1 %v944_v17 }
  0x3b   : > { %394 = vmatpush1.bf16.msra.mxu0 %v893_v26  ;;  %472 = vmatpush1.bf16.msra.mxu1 %v893_v26 }
  0x3c   : > { %395 = vmatprep.subr.bf16.mxu0 %v944_v17  ;;  %473 = vmatprep.subr.bf16.mxu1 %v944_v17 }
  0x3f   : > { %396 = vmatpush1.bf16.msra.mxu0 %v894_v27  ;;  %474 = vmatpush1.bf16.msra.mxu1 %v894_v27 }
  0x40   : > { %397 = vmatprep.subr.bf16.mxu0 %v944_v17  ;;  %475 = vmatprep.subr.bf16.mxu1 %v944_v17 }
  0x43   : > { %398 = vmatpush1.bf16.msra.mxu0 %v895_v28  ;;  %476 = vmatpush1.bf16.msra.mxu1 %v895_v28 }
  0x44   : > { %539 = vmatprep.subr.bf16.mxu0 %v944_v17  ;;  %621 = vmatprep.subr.bf16.mxu1 %v944_v17 }
  0x46   : > { %412 = vmatmul.mubr.bf16.vlgmr.msra.gmra.mrb[0].mxu0 %v896_v29  ;;  %490 = vmatmul.mubr.bf16.vlgmr.msra.gmra.mrb[0].mxu1 %v899_v30 }
  0x47   : > { %540 = vmatpush1.bf16.msra.mxu0 %v1022_v16  ;;  %622 = vmatpush1.bf16.msra.mxu1 %v1022_v16 }
  0x48   : > { %541 = vmatprep.subr.bf16.mxu0 %v944_v17  ;;  %623 = vmatprep.subr.bf16.mxu1 %v944_v17 }
  0x49   : > { %806 = vmatprep.mubr.msk.bf16.mxu0 %vm372_vm0, %v902_v31  ;;  %816 = vmatprep.mubr.msk.bf16.mxu1 %vm372_vm0, %v905_v32 }
  0x4b   : > { %542 = vmatpush1.bf16.msra.mxu0 %v1031_v18  ;;  %624 = vmatpush1.bf16.msra.mxu1 %v1031_v18 }
  0x4c   : > { %543 = vmatprep.subr.bf16.mxu0 %v944_v17  ;;  %625 = vmatprep.subr.bf16.mxu1 %v944_v17 }
  0x4e   : > { %420 = vmatmul.mubr.bf16.gmra.mrb[4].mxu0 %v904_v33  ;;  %498 = vmatmul.mubr.bf16.gmra.mrb[4].mxu1 %v907_v34 }
  0x4f   : > { %544 = vmatpush1.bf16.msra.mxu0 %v1041_v19  ;;  %626 = vmatpush1.bf16.msra.mxu1 %v1041_v19 }
  0x50   : > { %545 = vmatprep.subr.bf16.mxu0 %v944_v17  ;;  %627 = vmatprep.subr.bf16.mxu1 %v944_v17 }
  0x51   : > { %825 = vmatprep.mubr.msk.bf16.mxu0 %vm372_vm0, %v910_v35  ;;  %835 = vmatprep.mubr.msk.bf16.mxu1 %vm372_vm0, %v913_v36 }
  0x53   : > { %546 = vmatpush1.bf16.msra.mxu0 %v1050_v20  ;;  %628 = vmatpush1.bf16.msra.mxu1 %v1050_v20 }
  0x54   : > { %547 = vmatprep.subr.bf16.mxu0 %v944_v17  ;;  %629 = vmatprep.subr.bf16.mxu1 %v944_v17 }
  0x57   : > { %548 = vmatpush1.bf16.msra.mxu0 %v1064_v23  ;;  %630 = vmatpush1.bf16.msra.mxu1 %v1064_v23 }
  0x58   : > { %549 = vmatprep.subr.bf16.mxu0 %v944_v17  ;;  %631 = vmatprep.subr.bf16.mxu1 %v944_v17 }
  0x5b   : > { %550 = vmatpush1.bf16.msra.mxu0 %v1074_v24  ;;  %632 = vmatpush1.bf16.msra.mxu1 %v1074_v24 }
  0x5c   : > { %551 = vmatprep.subr.bf16.mxu0 %v944_v17  ;;  %633 = vmatprep.subr.bf16.mxu1 %v944_v17 }
  0x5f   : > { %552 = vmatpush1.bf16.msra.mxu0 %v892_v25  ;;  %634 = vmatpush1.bf16.msra.mxu1 %v892_v25 }
  0x60   : > { %553 = vmatprep.subr.bf16.mxu0 %v944_v17  ;;  %635 = vmatprep.subr.bf16.mxu1 %v944_v17 }
  0x63   : > { %554 = vmatpush1.bf16.msra.mxu0 %v893_v26  ;;  %636 = vmatpush1.bf16.msra.mxu1 %v893_v26 }
  0x64   : > { %555 = vmatprep.subr.bf16.mxu0 %v944_v17  ;;  %637 = vmatprep.subr.bf16.mxu1 %v944_v17 }
  0x67   : > { %556 = vmatpush1.bf16.msra.mxu0 %v894_v27  ;;  %638 = vmatpush1.bf16.msra.mxu1 %v894_v27 }
  0x68   : > { %557 = vmatprep.subr.bf16.mxu0 %v944_v17  ;;  %639 = vmatprep.subr.bf16.mxu1 %v944_v17 }
  0x6b   : > { %558 = vmatpush1.bf16.msra.mxu0 %v895_v28  ;;  %640 = vmatpush1.bf16.msra.mxu1 %v895_v28 }
  0x6e   : > { %572 = vmatmul.mubr.bf16.vlgmr.msra.gmra.mrb[8].mxu0 %v908_v37  ;;  %654 = vmatmul.mubr.bf16.vlgmr.msra.gmra.mrb[8].mxu1 %v911_v38 }
  0x6f   : > { %826 = vmatprep.mubr.msk.bf16.mxu0 %vm372_vm0, %v914_v39  ;;  %836 = vmatprep.mubr.msk.bf16.mxu1 %vm372_vm0, %v916_v40 }
  0x76   : > { %580 = vmatmul.mubr.bf16.gmra.mrb[12].mxu0 %v918_v41  ;;  %662 = vmatmul.mubr.bf16.gmra.mrb[12].mxu1 %v919_v42 }
 0x119   : > { %v413_v43 = vpop.f32.mrb[0].mxu0  ;;  %v491_v44 = vpop.f32.mrb[0].mxu1 }
 0x11a   : > { %v506_v45 = vmax.f32 %v413_v43, %v491_v44  ;;  %v415_v46 = vpop.f32.mrb[1].mxu0  ;;  %v493_v47 = vpop.f32.mrb[1].mxu1 }
 0x11b   : > { %v416_v48 = vpop.f32.mrb[2].mxu0  ;;  %v494_v49 = vpop.f32.mrb[2].mxu1 }
 0x11c   : > { %v507_v50 = vmax.f32 %v416_v48, %v494_v49  ;;  %v418_v51 = vpop.f32.mrb[3].mxu0  ;;  %v496_v52 = vpop.f32.mrb[3].mxu1 }
 0x121   : > { %v421_v53 = vpop.f32.mrb[4].mxu0  ;;  %v499_v54 = vpop.f32.mrb[4].mxu1 }
 0x122   : > { %v423_v55 = vpop.f32.mrb[5].mxu0  ;;  %v508_v56 = vmax.f32 %v421_v53, %v499_v54  ;;  %v501_v57 = vpop.f32.mrb[5].mxu1 }
 0x123   : > { %v424_v58 = vpop.f32.mrb[6].mxu0  ;;  %v502_v59 = vpop.f32.mrb[6].mxu1 }
 0x124   : > { %v426_v60 = vpop.f32.mrb[7].mxu0  ;;  %v509_v61 = vmax.f32 %v424_v58, %v502_v59  ;;  %v504_v62 = vpop.f32.mrb[7].mxu1 }
 0x141   : > { %v573_v63 = vpop.f32.mrb[8].mxu0  ;;  %v655_v0 = vpop.f32.mrb[8].mxu1 }
 0x142   : > { %v588_v1 = vmax.f32 %v506_v45, %v573_v63  ;;  %v575_v2 = vpop.f32.mrb[9].mxu0  ;;  %v657_v3 = vpop.f32.mrb[9].mxu1 }
 0x143   : > { %v576_v5 = vpop.f32.mrb[10].mxu0  ;;  %v658_v6 = vpop.f32.mrb[10].mxu1 }
 0x144   : > { %v670_v7 = vmax.f32 %v588_v1, %v655_v0  ;;  %v589_v8 = vmax.f32 %v507_v50, %v576_v5  ;;  %v578_v9 = vpop.f32.mrb[11].mxu0  ;;  %v660_v10 = vpop.f32.mrb[11].mxu1 }
 0x146   : > { %v681_v11 = vadd.f32 %v837_v4, %v670_v7  ;;  %v671_v12 = vmax.f32 %v589_v8, %v658_v6 }
 0x148   : > { %v689_v13 = vmul.f32 0.2, %v681_v11  ;;  %v682_v14 = vadd.f32 %v837_v4, %v671_v12  ;;  %vm685_vm1 = vcmp.ge.f32.partialorder %v681_v11, 0.0 }
 0x149   : > { %v581_v15 = vpop.f32.mrb[12].mxu0  ;;  %v663_v16 = vpop.f32.mrb[12].mxu1 }
 0x14a   : > { %vm686_vm2 = vcmp.ge.f32.partialorder %v682_v14, 0.0  ;;  %v690_v17 = vmul.f32 0.2, %v682_v14  ;;  %v590_v18 = vmax.f32 %v508_v56, %v581_v15  ;;  %v583_v19 = vpop.f32.mrb[13].mxu0  ;;  %v665_v20 = vpop.f32.mrb[13].mxu1  ;;  %v693_v23 = vsel %vm685_vm1, %v681_v11, %v689_v13 }
 0x14b   : > { %v584_v21 = vpop.f32.mrb[14].mxu0  ;;  %v666_v22 = vpop.f32.mrb[14].mxu1 }
 0x14c   : > { %v694_v24 = vsel %vm686_vm2, %v682_v14, %v690_v17  ;;  %v672_v25 = vmax.f32 %v590_v18, %v663_v16  ;;  %v591_v26 = vmax.f32 %v509_v61, %v584_v21  ;;  %v586_v27 = vpop.f32.mrb[15].mxu0  ;;  %v668_v28 = vpop.f32.mrb[15].mxu1 }
 0x14d   : > { %v853_v29 = vpack.c.bf16 %v694_v24, %v693_v23 }
 0x14e   : > { %v683_v30 = vadd.f32 %v837_v4, %v672_v25  ;;  %v673_v31 = vmax.f32 %v591_v26, %v666_v22 }
 0x14f   : > { %854 = vst [vmem:[%s267_s5] sm:$0xff] %v853_v29  }
 0x150   : > { %v691_v32 = vmul.f32 0.2, %v683_v30  ;;  %v684_v33 = vadd.f32 %v837_v4, %v673_v31  ;;  %vm687_vm3 = vcmp.ge.f32.partialorder %v683_v30, 0.0 }
 0x152   : > { %vm688_vm4 = vcmp.ge.f32.partialorder %v684_v33, 0.0  ;;  %v692_v34 = vmul.f32 0.2, %v684_v33  ;;  %v695_v35 = vsel %vm687_vm3, %v683_v30, %v691_v32 }
 0x154   : > { %v696_v36 = vsel %vm688_vm4, %v684_v33, %v692_v34 }
 0x155   : > { %v858_v37 = vpack.c.bf16 %v696_v36, %v695_v35 }
 0x157   : > { %860 = vst [vmem:[%s267_s5 + $0x8] sm:$0xff] %v858_v37  }
 0x158 PF: > { %p10_p9 = scmp.ge.s32.totalorder %s982_s16, 4   ;;  %s1174_s12 = smov %s938_s13 }
 0x159   : > { %s1175_s13 = smov %s991_s19  ;;  %s1176_s14 = smov %s982_s16 }
 0x15a   :  { %12 = sbr.rel (!%p10_p9) target bundleno = 2 (0x2), region = 108 }

// kernel: net_forward.5
= control target key start
LH: loop header
LB: loop body
LE: loop exit
PB: predicated region body
PF: predicated region fallthrough
CT: control target
= control target key end

     0   :  { %v766_v0 = vmov 0   ;;  %vm257_vm0 = vcmask 130048   ;;  %v767_v30 = vmov 0.0   ;;  %vm768_vm1 = vmmov 0   ;;  %s986_s1 = inlined_call_operand.vmem [shape: bf16[400,128], index: 1, kind: input, shape index: {}]   ;;  %s987_s0 = inlined_call_operand.vmem [shape: bf16[16,400], index: 0, kind: input, shape index: {}]   ;;  %s988_s3 = inlined_call_operand.vmem [shape: bf16[128,128], index: 3, kind: input, shape index: {}]   ;;  %s989_s5 = inlined_call_operand.vmem [shape: bf16[128,128], index: 5, kind: input, shape index: {}]   ;;  %s990_s2 = inlined_call_operand.vmem [shape: f32[1,128], index: 2, kind: input, shape index: {}]   ;;  %s991_s4 = inlined_call_operand.vmem [shape: f32[1,128], index: 4, kind: input, shape index: {}]   ;;  %s992_s6 = inlined_call_operand.vmem [shape: f32[1,128], index: 6, kind: input, shape index: {}]   ;;  %s993_s7 = inlined_call_operand.vmem [shape: f32[16,128], index: 7, kind: output, shape index: {}]  }
   0x1   :  { %302 = vmatprep.subr.bf16.mxu1 %v766_v0  ;;  %v719_v1 = vld [vmem:[%s986_s1 + $0x40] sm:$0xff]   ;;  %v722_v4 = vld [vmem:[%s986_s1 + $0x48] sm:$0xff]   ;;  %v725_v7 = vld [vmem:[%s986_s1 + $0x50] sm:$0xff]  }
   0x2   :  { %v720_v2 = vld [vmem:[%s986_s1 + $0x80] sm:$0xff]   ;;  %636 = vmatprep.subr.bf16.mxu0 %v719_v1  ;;  %v723_v5 = vld [vmem:[%s986_s1 + $0x88] sm:$0xff]   ;;  %v726_v8 = vld [vmem:[%s986_s1 + $0x90] sm:$0xff]  }
   0x3   :  { %v721_v3 = vld [vmem:[%s986_s1] sm:$0xff]   ;;  %303 = vmatpush1.bf16.msra.mxu1 %v720_v2  ;;  %v724_v6 = vld [vmem:[%s986_s1 + $0x8] sm:$0xff]   ;;  %v727_v9 = vld [vmem:[%s986_s1 + $0x10] sm:$0xff]  }
   0x4   :  { %637 = vmatpush3.bf16.msra.mxu0 %v721_v3  ;;  %304 = vmatprep.subr.bf16.mxu1 %v766_v0  ;;  %v728_v10 = vld [vmem:[%s986_s1 + $0x58] sm:$0xff]   ;;  %v731_v13 = vld [vmem:[%s986_s1 + $0x60] sm:$0xff]   ;;  %v734_v16 = vld [vmem:[%s986_s1 + $0x68] sm:$0xff]  }
   0x5   :  { %638 = vmatprep.subr.bf16.mxu0 %v722_v4  ;;  %v729_v11 = vld [vmem:[%s986_s1 + $0x98] sm:$0xff]   ;;  %v732_v14 = vld [vmem:[%s986_s1 + $0xa0] sm:$0xff]   ;;  %v735_v17 = vld [vmem:[%s986_s1 + $0xa8] sm:$0xff]  }
   0x6   :  { %v730_v12 = vld [vmem:[%s986_s1 + $0x18] sm:$0xff]   ;;  %v733_v15 = vld [vmem:[%s986_s1 + $0x20] sm:$0xff]   ;;  %v736_v18 = vld [vmem:[%s986_s1 + $0x28] sm:$0xff]  }
   0x7   :  { %305 = vmatpush1.bf16.msra.mxu1 %v723_v5  ;;  %v737_v19 = vld [vmem:[%s986_s1 + $0x70] sm:$0xff]   ;;  %v740_v22 = vld [vmem:[%s986_s1 + $0x78] sm:$0xff]   ;;  %v746_v28 = vld [vmem:[%s986_s1 + $0xc0] sm:$0xff]  }
   0x8   :  { %639 = vmatpush3.bf16.msra.mxu0 %v724_v6  ;;  %306 = vmatprep.subr.bf16.mxu1 %v766_v0  ;;  %v738_v20 = vld [vmem:[%s986_s1 + $0xb0] sm:$0xff]   ;;  %v741_v24 = vld [vmem:[%s986_s1 + $0xb8] sm:$0xff]   ;;  %v750_v29 = vld [vmem:[%s988_s3] sm:$0xff]  }
   0x9   :  { %640 = vmatprep.subr.bf16.mxu0 %v725_v7  ;;  %v739_v21 = vld [vmem:[%s986_s1 + $0x30] sm:$0xff]   ;;  %v749_v25 = vld [vmem:[%s987_s0 + $0xc] ss:$16 sps:$4 sm:$0xff]   ;;  %v747_v31 = vld [vmem:[%s987_s0 + $0x8] ss:$16 sps:$4 sm:$0xff]  }
   0xa   :  { %v745_v23 = vld [vmem:[%s987_s0 + $0x4] ss:$16 sps:$4 sm:$0xff]   ;;  %v742_v26 = vld [vmem:[%s986_s1 + $0x38] sm:$0xff]   ;;  %v743_v27 = vld [vmem:[%s987_s0] ss:$16 sps:$4 sm:$0xff]   ;;  %617 = vmatprep.mubr.msk.bf16.mxu1 %vm257_vm0, %v749_v25 }
   0xb   :  { %307 = vmatpush1.bf16.msra.mxu1 %v726_v8  ;;  %293 = vmatprep.mubr.bf16.mxu0 %v745_v23  ;;  %v751_v32 = vld [vmem:[%s988_s3 + $0x8] sm:$0xff]   ;;  %v752_v33 = vld [vmem:[%s988_s3 + $0x10] sm:$0xff]   ;;  %v753_v34 = vld [vmem:[%s988_s3 + $0x18] sm:$0xff]  }
   0xc   :  { %641 = vmatpush3.bf16.msra.mxu0 %v727_v9  ;;  %308 = vmatprep.subr.bf16.mxu1 %v766_v0  ;;  %v754_v35 = vld [vmem:[%s988_s3 + $0x20] sm:$0xff]   ;;  %v755_v36 = vld [vmem:[%s988_s3 + $0x28] sm:$0xff]   ;;  %v756_v37 = vld [vmem:[%s988_s3 + $0x30] sm:$0xff]  }
   0xd   :  { %642 = vmatprep.subr.bf16.mxu0 %v728_v10  ;;  %v757_v38 = vld [vmem:[%s988_s3 + $0x38] sm:$0xff]   ;;  %v758_v39 = vld [vmem:[%s989_s5] sm:$0xff]   ;;  %v759_v40 = vld [vmem:[%s989_s5 + $0x8] sm:$0xff]  }
   0xe   :  { %v760_v41 = vld [vmem:[%s989_s5 + $0x10] sm:$0xff]   ;;  %v761_v42 = vld [vmem:[%s989_s5 + $0x18] sm:$0xff]   ;;  %v762_v43 = vld [vmem:[%s989_s5 + $0x20] sm:$0xff]  }
   0xf   :  { %309 = vmatpush1.bf16.msra.mxu1 %v729_v11  ;;  %v763_v44 = vld [vmem:[%s989_s5 + $0x28] sm:$0xff]   ;;  %v587_v47 = vld [vmem:[%s990_s2] ss:$0 sm:$0xff]  ;;  %v764_v1 = vld [vmem:[%s989_s5 + $0x30] sm:$0xff]  }
  0x10   :  { %643 = vmatpush3.bf16.msra.mxu0 %v730_v12  ;;  %310 = vmatprep.subr.bf16.mxu1 %v766_v0  ;;  %v765_v2 = vld [vmem:[%s989_s5 + $0x38] sm:$0xff]   ;;  %v618_v3 = vld [vmem:[%s991_s4] ss:$0 sm:$0xff] }
  0x11   :  { %644 = vmatprep.subr.bf16.mxu0 %v731_v13 }
  0x13   :  { %311 = vmatpush1.bf16.msra.mxu1 %v732_v14 }
  0x14   :  { %645 = vmatpush3.bf16.msra.mxu0 %v733_v15  ;;  %312 = vmatprep.subr.bf16.mxu1 %v766_v0  ;;  %v627_v15 = vld [vmem:[%s992_s6] ss:$0 sm:$0xff] }
  0x15   :  { %646 = vmatprep.subr.bf16.mxu0 %v734_v16 }
  0x17   :  { %313 = vmatpush1.bf16.msra.mxu1 %v735_v17 }
  0x18   :  { %647 = vmatpush3.bf16.msra.mxu0 %v736_v18  ;;  %314 = vmatprep.subr.bf16.mxu1 %v766_v0 }
  0x19   :  { %648 = vmatprep.subr.bf16.mxu0 %v737_v19 }
  0x1b   :  { %315 = vmatpush1.bf16.msra.mxu1 %v738_v20 }
  0x1c   :  { %649 = vmatpush3.bf16.msra.mxu0 %v739_v21  ;;  %316 = vmatprep.subr.bf16.mxu1 %v766_v0 }
  0x1d   :  { %650 = vmatprep.subr.bf16.mxu0 %v740_v22 }
  0x1f   :  { %317 = vmatpush1.bf16.msra.mxu1 %v741_v24 }
  0x20   :  { %651 = vmatpush3.bf16.msra.mxu0 %v742_v26  ;;  %318 = vmatprep.subr.bf16.mxu1 %v766_v0 }
  0x21   :  { %676 = vmatprep.subr.bf16.mxu0 %v767_v30 }
  0x23   :  { %294 = vmatmul.mubr.bf16.vlgmr.msra.gmra.mrb[0].mxu0 %v743_v27  ;;  %319 = vmatpush1.bf16.msra.mxu1 %v746_v28 }
  0x24   :  { %677 = vmatpush3.bf16.msra.mxu0 %v750_v29  ;;  %696 = vmatprep.subr.bf16.mxu1 %v767_v30 }
  0x25   :  { %678 = vmatprep.subr.bf16.mxu0 %v767_v30  ;;  %692 = vmatprep.mubr.msk.bf16.mxu0 %vm768_vm1, %v767_v30 }
  0x26   :  { %335 = vmatmul.mubr.bf16.vlgmr.msra.gmra.mrb[0].mxu1 %v747_v31 }
  0x27   :  { %712 = vmatprep.mubr.msk.bf16.mxu1 %vm768_vm1, %v767_v30  ;;  %697 = vmatpush3.bf16.msra.mxu1 %v758_v39 }
  0x28   :  { %679 = vmatpush3.bf16.msra.mxu0 %v751_v32  ;;  %698 = vmatprep.subr.bf16.mxu1 %v767_v30 }
  0x29   :  { %680 = vmatprep.subr.bf16.mxu0 %v767_v30 }
  0x2b   :  { %699 = vmatpush3.bf16.msra.mxu1 %v759_v40 }
  0x2c   :  { %681 = vmatpush3.bf16.msra.mxu0 %v752_v33  ;;  %700 = vmatprep.subr.bf16.mxu1 %v767_v30 }
  0x2d   :  { %682 = vmatprep.subr.bf16.mxu0 %v767_v30 }
  0x2f   :  { %701 = vmatpush3.bf16.msra.mxu1 %v760_v41 }
  0x30   :  { %683 = vmatpush3.bf16.msra.mxu0 %v753_v34  ;;  %702 = vmatprep.subr.bf16.mxu1 %v767_v30 }
  0x31   :  { %684 = vmatprep.subr.bf16.mxu0 %v767_v30 }
  0x33   :  { %703 = vmatpush3.bf16.msra.mxu1 %v761_v42 }
  0x34   :  { %685 = vmatpush3.bf16.msra.mxu0 %v754_v35  ;;  %704 = vmatprep.subr.bf16.mxu1 %v767_v30 }
  0x35   :  { %686 = vmatprep.subr.bf16.mxu0 %v767_v30 }
  0x37   :  { %705 = vmatpush3.bf16.msra.mxu1 %v762_v43 }
  0x38   :  { %687 = vmatpush3.bf16.msra.mxu0 %v755_v36  ;;  %706 = vmatprep.subr.bf16.mxu1 %v767_v30 }
  0x39   :  { %688 = vmatprep.subr.bf16.mxu0 %v767_v30 }
  0x3b   :  { %707 = vmatpush3.bf16.msra.mxu1 %v763_v44 }
  0x3c   :  { %689 = vmatpush3.bf16.msra.mxu0 %v756_v37  ;;  %708 = vmatprep.subr.bf16.mxu1 %v767_v30 }
  0x3d   :  { %690 = vmatprep.subr.bf16.mxu0 %v767_v30 }
  0x3f   :  { %709 = vmatpush3.bf16.msra.mxu1 %v764_v1 }
  0x40   :  { %691 = vmatpush3.bf16.msra.mxu0 %v757_v38  ;;  %710 = vmatprep.subr.bf16.mxu1 %v767_v30 }
  0x43   :  { %711 = vmatpush3.bf16.msra.mxu1 %v765_v2 }
  0xf6   :  { %v652_v45 = vpop.f32.mrb[0].mxu0 }
  0xf7   :  { %v653_v46 = vpop.f32.mrb[1].mxu0 }
  0xf8   :  { %v654_v48 = vadd.f32 %v653_v46, %v652_v45  ;;  %v655_v49 = vpop.f32.mrb[2].mxu0 }
  0xf9   :  { %v656_v50 = vpop.f32.mrb[3].mxu0  ;;  %v336_v51 = vpop.f32.mrb[0].mxu1 }
  0xfa   :  { %v657_v52 = vadd.f32 %v656_v50, %v655_v49  ;;  %v296_v53 = vadd.f32 %v654_v48, %v587_v47  ;;  %v338_v54 = vpop.f32.mrb[1].mxu1 }
  0xfb   :  { %v339_v55 = vpop.f32.mrb[2].mxu1 }
  0xfc   :  { %v337_v56 = vadd.f32 %v336_v51, %v296_v53  ;;  %v299_v57 = vadd.f32 %v657_v52, %v587_v47  ;;  %v341_v58 = vpop.f32.mrb[3].mxu1 }
  0xfe   :  { %v345_v59 = vmul.f32 0.2, %v337_v56  ;;  %v340_v60 = vadd.f32 %v339_v55, %v299_v57  ;;  %vm343_vm2 = vcmp.ge.f32.partialorder %v337_v56, 0.0 }
 0x100   :  { %vm344_vm3 = vcmp.ge.f32.partialorder %v340_v60, 0.0  ;;  %v346_v61 = vmul.f32 0.2, %v340_v60  ;;  %v347_v62 = vsel %vm343_vm2, %v337_v56, %v345_v59 }
 0x102   :  { %v348_v63 = vsel %vm344_vm3, %v340_v60, %v346_v61 }
 0x103   :  { %v349_v0 = vpack.c.bf16 %v348_v63, %v347_v62 }
 0x105   :  { %693 = vmatmul.mubr.bf16.vlgmr.msra.gmra.mrb[4].mxu0 %v349_v0 }
 0x1d8   :  { %v455_v4 = vpop.f32.mrb[4].mxu0 }
 0x1d9   :  { %v456_v5 = vadd.f32 %v618_v3, %v455_v4  ;;  %v694_v6 = vpop.f32.mrb[5].mxu0 }
 0x1da   :  { %v458_v7 = vpop.f32.mrb[6].mxu0 }
 0x1db   :  { %v464_v8 = vmul.f32 0.2, %v456_v5  ;;  %v459_v9 = vadd.f32 %v618_v3, %v458_v7  ;;  %v695_v10 = vpop.f32.mrb[7].mxu0  ;;  %vm462_vm4 = vcmp.ge.f32.partialorder %v456_v5, 0.0 }
 0x1dd   :  { %vm463_vm5 = vcmp.ge.f32.partialorder %v459_v9, 0.0  ;;  %v465_v11 = vmul.f32 0.2, %v459_v9  ;;  %v466_v12 = vsel %vm462_vm4, %v456_v5, %v464_v8 }
 0x1df   :  { %v467_v13 = vsel %vm463_vm5, %v459_v9, %v465_v11 }
 0x1e0   :  { %v468_v14 = vpack.c.bf16 %v467_v13, %v466_v12 }
 0x1e2   :  { %713 = vmatmul.mubr.bf16.vlgmr.msra.gmra.mrb[4].mxu1 %v468_v14 }
 0x2b5   :  { %v574_v16 = vpop.f32.mrb[4].mxu1 }
 0x2b6   :  { %v575_v17 = vadd.f32 %v627_v15, %v574_v16  ;;  %v714_v18 = vpop.f32.mrb[5].mxu1 }
 0x2b7   :  { %v577_v19 = vpop.f32.mrb[6].mxu1 }
 0x2b8   :  { %581 = vst [vmem:[%s993_s7] sm:$0xff] %v575_v17  ;;  %v578_v20 = vadd.f32 %v627_v15, %v577_v19  ;;  %v715_v21 = vpop.f32.mrb[7].mxu1 }
 0x2ba   :  { %582 = vst [vmem:[%s993_s7 + $0x8] sm:$0xff] %v578_v20 }

</bundles_post_ra>
